<compile_context>
chip_gen: v6e
topology: v6e:2x2x1
jax: 0.10.0
libtpu: 0.0.40
codegen_flags: <defaults>
</compile_context>

<pallas_src>
import jax
import jax.numpy as jnp
import numpy as np
from jax.experimental import pallas as pl
from jax.experimental.pallas import tpu as pltpu


def _round_up(n, m):
    return (n + m - 1) // m * m


def lstm_kernel(x_ref, len_ref, wih_ref, whh_ref, b_ref, hout_ref, h_sc, c_sc):
    # grid = (batch_tiles [parallel], time_blocks [arbitrary, sequential])
    s = pl.program_id(1)
    n_s = pl.num_programs(1)
    tt, bt, _ = x_ref.shape          # (TT, Bt, I)
    hp = h_sc.shape[1]               # padded hidden (multiple of 128)

    @pl.when(s == 0)
    def _init():
        h_sc[...] = jnp.zeros_like(h_sc)
        c_sc[...] = jnp.zeros_like(c_sc)

    # Hoisted loop-invariant broadcasts (JAX does not CSE broadcast_in_dim).
    bias = jnp.broadcast_to(b_ref[...], (bt, 4 * hp))     # (Bt, 4Hp) f32
    lens = jnp.broadcast_to(len_ref[...], (bt, hp))       # (Bt, Hp) int32
    t0 = s * tt                                           # global timestep of local step 0

    def step(j, carry):
        h, c = carry                                      # f32 (Bt, Hp)
        x_t = x_ref[j]                                    # (Bt, I) bf16
        # gates = x @ W_ih^T + h @ W_hh^T + (b_ih + b_hh)   (gate order i,f,g,o)
        gates = (jnp.dot(x_t, wih_ref[...], preferred_element_type=jnp.float32)
                 + jnp.dot(h.astype(jnp.bfloat16), whh_ref[...],
                           preferred_element_type=jnp.float32)
                 + bias)                                  # (Bt, 4Hp) f32
        i_g = jax.nn.sigmoid(gates[:, 0 * hp:1 * hp])     # lane-aligned slices
        f_g = jax.nn.sigmoid(gates[:, 1 * hp:2 * hp])
        g_g = jnp.tanh(gates[:, 2 * hp:3 * hp])
        o_g = jax.nn.sigmoid(gates[:, 3 * hp:4 * hp])
        c_new = f_g * c + i_g * g_g
        h_new = o_g * jnp.tanh(c_new)
        # pack_padded_sequence semantics: freeze state at/after each sequence's end
        valid = (t0 + j) < lens                           # (Bt, Hp) bool
        return jnp.where(valid, h_new, h), jnp.where(valid, c_new, c)

    h, c = jax.lax.fori_loop(0, tt, step, (h_sc[...], c_sc[...]), unroll=True)
    h_sc[...] = h
    c_sc[...] = c

    @pl.when(s == n_s - 1)
    def _fin():
        hout_ref[...] = h


def lstm_rnn_forward(x, lengths, params, *, tt=8):
    """x: (B, T, I) float32, lengths: (B,) int32 (sorted descending, like
    pack_padded_sequence's default). Returns (1, B, 1) like output_layer(hidden)."""
    w_ih, w_hh, b_ih, b_hh, w_out, b_out = params         # PyTorch-shaped params
    B, T, I = x.shape
    H = w_hh.shape[1]

    Hp = _round_up(H, 128)                                # lane-aligned gate blocks
    Bt = 128 if B >= 128 else _round_up(B, 8)             # batch tile (sublane-aligned)
    Bp = _round_up(B, Bt)
    Tp = _round_up(T, tt)

    # --- pack / pad weights; padding is per-gate so i,f,g,o stay lane-aligned ---
    def pad_gate_cols(w_t, rows_to):                      # (R, 4H) -> (rows_to, 4Hp)
        r = w_t.shape[0]
        w4 = w_t.reshape(r, 4, H)
        w4 = jnp.pad(w4, ((0, rows_to - r), (0, 0), (0, Hp - H)))
        return w4.reshape(rows_to, 4 * Hp)

    wih_p = pad_gate_cols(w_ih.T, I).astype(jnp.bfloat16)       # (I, 4Hp)
    whh_p = pad_gate_cols(w_hh.T, Hp).astype(jnp.bfloat16)      # (Hp, 4Hp)
    bias_p = jnp.pad((b_ih + b_hh).reshape(4, H),
                     ((0, 0), (0, Hp - H))).reshape(1, 4 * Hp).astype(jnp.float32)
    # NOTE: padded gate columns stay exactly 0 in h/c (g=tanh(0)=0), so they never
    # contaminate the real H columns; we slice them off below.

    # --- pad activations, time-major, bf16 for MXU / halved DMA ---
    x_p = jnp.pad(x, ((0, Bp - B), (0, Tp - T), (0, 0))).astype(jnp.bfloat16)
    x_tm = jnp.transpose(x_p, (1, 0, 2))                        # (Tp, Bp, I)
    len_p = jnp.pad(lengths.astype(jnp.int32), (0, Bp - B)).reshape(Bp, 1)

    num_bt = Bp // Bt
    num_tt = Tp // tt

    # TODO(synk): for large I/H on v7x (32 MiB scoped VMEM), single-buffer the
    # invariant weight blocks (pipeline_mode=pl.Buffered(1)) / raise vmem_limit_bytes.
    h_final = pl.pallas_call(
        lstm_kernel,
        out_shape=jax.ShapeDtypeStruct((Bp, Hp), jnp.float32),
        grid_spec=pltpu.PrefetchScalarGridSpec(
            num_scalar_prefetch=0,
            grid=(num_bt, num_tt),
            in_specs=[
                pl.BlockSpec((tt, Bt, I), lambda b, s: (s, b, 0)),   # x block
                pl.BlockSpec((Bt, 1), lambda b, s: (b, 0)),          # lengths (resident)
                pl.BlockSpec((I, 4 * Hp), lambda b, s: (0, 0)),      # W_ih^T (resident)
                pl.BlockSpec((Hp, 4 * Hp), lambda b, s: (0, 0)),     # W_hh^T (resident)
                pl.BlockSpec((1, 4 * Hp), lambda b, s: (0, 0)),      # b_ih + b_hh
            ],
            out_specs=pl.BlockSpec((Bt, Hp), lambda b, s: (b, 0)),   # h_final slab
            scratch_shapes=[
                pltpu.VMEM((Bt, Hp), jnp.float32),   # h state
                pltpu.VMEM((Bt, Hp), jnp.float32),   # c state
            ],
        ),
        compiler_params=pltpu.CompilerParams(
            dimension_semantics=("parallel", "arbitrary")),
    )(x_tm, len_p, wih_p, whh_p, bias_p)

    h = h_final[:B, :H]                                   # drop batch/hidden padding
    # output_layer(hidden): tiny GEMV done outside the kernel (lane-dense kernel output)
    out = h @ w_out.T + b_out                             # (B, 1)
    return out.reshape(1, B, 1)                           # (num_layers=1, B, 1)


def init_params(key, input_size, hidden_size):
    """PyTorch-shaped params: W_ih (4H,I), W_hh (4H,H), b_ih (4H,), b_hh (4H,),
    Linear W (1,H), b (1,). Gate order i,f,g,o."""
    k = 1.0 / np.sqrt(hidden_size)
    keys = jax.random.split(key, 6)
    w_ih = jax.random.uniform(keys[0], (4 * hidden_size, input_size), jnp.float32, -k, k)
    w_hh = jax.random.uniform(keys[1], (4 * hidden_size, hidden_size), jnp.float32, -k, k)
    b_ih = jax.random.uniform(keys[2], (4 * hidden_size,), jnp.float32, -k, k)
    b_hh = jax.random.uniform(keys[3], (4 * hidden_size,), jnp.float32, -k, k)
    w_out = jax.random.uniform(keys[4], (1, hidden_size), jnp.float32, -k, k)
    b_out = jax.random.uniform(keys[5], (1,), jnp.float32, -k, k)
    return (w_ih, w_hh, b_ih, b_hh, w_out, b_out)


def reference_forward(x, lengths, params):
    """Pure-JAX reference (masked LSTM scan) mirroring the kernel's bf16 matmul /
    f32 state arithmetic, on the unpadded shapes."""
    w_ih, w_hh, b_ih, b_hh, w_out, b_out = params
    B, T, I = x.shape
    H = w_hh.shape[1]
    wih_t = w_ih.T.astype(jnp.bfloat16)
    whh_t = w_hh.T.astype(jnp.bfloat16)
    bias = (b_ih + b_hh)[None, :]

    def step(carry, inp):
        h, c = carry
        x_t, t = inp
        gates = (jnp.dot(x_t.astype(jnp.bfloat16), wih_t,
                         preferred_element_type=jnp.float32)
                 + jnp.dot(h.astype(jnp.bfloat16), whh_t,
                           preferred_element_type=jnp.float32)
                 + bias)
        i_g = jax.nn.sigmoid(gates[:, 0:H])
        f_g = jax.nn.sigmoid(gates[:, H:2 * H])
        g_g = jnp.tanh(gates[:, 2 * H:3 * H])
        o_g = jax.nn.sigmoid(gates[:, 3 * H:4 * H])
        c_new = f_g * c + i_g * g_g
        h_new = o_g * jnp.tanh(c_new)
        valid = (t < lengths)[:, None]
        return (jnp.where(valid, h_new, h), jnp.where(valid, c_new, c)), None

    x_tm = jnp.transpose(x, (1, 0, 2))
    ts = jnp.arange(T, dtype=jnp.int32)
    (h, _), _ = jax.lax.scan(
        step,
        (jnp.zeros((B, H), jnp.float32), jnp.zeros((B, H), jnp.float32)),
        (x_tm, ts))
    return (h @ w_out.T + b_out).reshape(1, B, 1)


if __name__ == "__main__":
    B, T, input_size, hidden_size = 2, 16, 16, 32

    key = jax.random.PRNGKey(0)
    k_x, k_p = jax.random.split(key)
    x = jax.random.normal(k_x, (B, T, input_size), jnp.float32)
    # pack_padded_sequence default requires lengths sorted in decreasing order
    lengths = jnp.array([16, 9], dtype=jnp.int32)

    params = init_params(k_p, input_size, hidden_size)

    out = lstm_rnn_forward(x, lengths, params, tt=8)
    out = jax.block_until_ready(out)

    ref = reference_forward(x, lengths, params)
    assert out.shape == (1, B, 1)
    np.testing.assert_allclose(np.asarray(out), np.asarray(ref),
                               rtol=1e-3, atol=1e-4)

    print("KERNEL_OK")
</pallas_src>

<mosaic_0001>
module attributes {stable_mosaic.version = 11 : i64} {
  func.func @lstm_kernel(%arg0: i32, %arg1: i32, %arg2: memref<8x8x16xbf16, #tpu.memory_space<vmem>>, %arg3: memref<8x1xi32, #tpu.memory_space<vmem>>, %arg4: memref<16x512xbf16, #tpu.memory_space<vmem>>, %arg5: memref<128x512xbf16, #tpu.memory_space<vmem>>, %arg6: memref<1x512xf32, #tpu.memory_space<vmem>>, %arg7: memref<8x128xf32, #tpu.memory_space<vmem>>, %arg8: memref<8x128xf32, #tpu.memory_space<vmem>>, %arg9: memref<8x128xf32, #tpu.memory_space<vmem>>) attributes {dimension_semantics = [#tpu.dimension_semantics<parallel>, #tpu.dimension_semantics<arbitrary>], iteration_bounds = array<i64: 1, 2>, scalar_prefetch = 0 : i64, scratch_operands = 2 : i64, tpu.core_type = #tpu.core_type<tc>, window_params = [{transform_indices = @transform_0, window_bounds = array<i64: 8, 8, 16>}, {transform_indices = @transform_1, window_bounds = array<i64: 8, 1>}, {pipeline_mode = #tpu.pipeline_mode<synchronous>, transform_indices = @transform_2, window_bounds = array<i64: 16, 512>}, {pipeline_mode = #tpu.pipeline_mode<synchronous>, transform_indices = @transform_3, window_bounds = array<i64: 128, 512>}, {pipeline_mode = #tpu.pipeline_mode<synchronous>, transform_indices = @transform_4, window_bounds = array<i64: 1, 512>}, {transform_indices = @transform_5, window_bounds = array<i64: 8, 128>}]} {
    %c0_i32 = arith.constant 0 : i32
    %0 = arith.cmpi eq, %arg1, %c0_i32 : i32
    %1 = arith.extui %0 : i1 to i32
    %c0_i32_0 = arith.constant 0 : i32
    %2 = arith.cmpi ne, %1, %c0_i32_0 : i32
    scf.if %2 {
      %cst_103 = arith.constant 0.000000e+00 : f32
      %337 = vector.broadcast %cst_103 : f32 to vector<8x128xf32>
      %c0_104 = arith.constant 0 : index
      %c0_105 = arith.constant 0 : index
      %338 = vector.load %arg8[%c0_104, %c0_105] : memref<8x128xf32, #tpu.memory_space<vmem>>, vector<8x128xf32>
      tpu.vector_store %arg8[%c0_104, %c0_105], %337 {strides = array<i32>} : memref<8x128xf32, #tpu.memory_space<vmem>>, vector<8x128xf32>,
      %cst_106 = arith.constant 0.000000e+00 : f32
      %339 = vector.broadcast %cst_106 : f32 to vector<8x128xf32>
      %c0_107 = arith.constant 0 : index
      %c0_108 = arith.constant 0 : index
      %340 = vector.load %arg9[%c0_107, %c0_108] : memref<8x128xf32, #tpu.memory_space<vmem>>, vector<8x128xf32>
      tpu.vector_store %arg9[%c0_107, %c0_108], %339 {strides = array<i32>} : memref<8x128xf32, #tpu.memory_space<vmem>>, vector<8x128xf32>,
    } else {
    }
    %c0 = arith.constant 0 : index
    %c0_1 = arith.constant 0 : index
    %3 = vector.load %arg6[%c0, %c0_1] : memref<1x512xf32, #tpu.memory_space<vmem>>, vector<1x512xf32>
    %4 = vector.shape_cast %3 : vector<1x512xf32> to vector<1x512xf32>
    %5 = vector.broadcast %4 : vector<1x512xf32> to vector<8x512xf32>
    %c0_2 = arith.constant 0 : index
    %c0_3 = arith.constant 0 : index
    %6 = vector.load %arg3[%c0_2, %c0_3] : memref<8x1xi32, #tpu.memory_space<vmem>>, vector<8x1xi32>
    %7 = vector.shape_cast %6 : vector<8x1xi32> to vector<8x1xi32>
    %8 = vector.broadcast %7 : vector<8x1xi32> to vector<8x128xi32>
    %c8_i32 = arith.constant 8 : i32
    %9 = arith.muli %arg1, %c8_i32 : i32
    %c0_4 = arith.constant 0 : index
    %c0_5 = arith.constant 0 : index
    %10 = vector.load %arg8[%c0_4, %c0_5] : memref<8x128xf32, #tpu.memory_space<vmem>>, vector<8x128xf32>
    %c0_6 = arith.constant 0 : index
    %c0_7 = arith.constant 0 : index
    %11 = vector.load %arg9[%c0_6, %c0_7] : memref<8x128xf32, #tpu.memory_space<vmem>>, vector<8x128xf32>
    %c0_i32_8 = arith.constant 0 : i32
    %12 = arith.index_cast %c0_i32_8 : i32 to index
    %c0_9 = arith.constant 0 : index
    %c0_10 = arith.constant 0 : index
    %13 = vector.load %arg2[%12, %c0_9, %c0_10] : memref<8x8x16xbf16, #tpu.memory_space<vmem>>, vector<1x8x16xbf16>
    %14 = vector.shape_cast %13 : vector<1x8x16xbf16> to vector<8x16xbf16>
    %c0_11 = arith.constant 0 : index
    %c0_12 = arith.constant 0 : index
    %15 = vector.load %arg4[%c0_11, %c0_12] : memref<16x512xbf16, #tpu.memory_space<vmem>>, vector<16x512xbf16>
    %cst = arith.constant dense<0.000000e+00> : vector<8x512xf32>
    %16 = tpu.matmul %14, %15, %cst {dimension_numbers = #tpu.dot_dimension_numbers<[1], [0], [0], [1], [0, 0, 1, 1], [], []>} : vector<8x16xbf16>, vector<16x512xbf16>, vector<8x512xf32> -> vector<8x512xf32>
    %17 = arith.truncf %10 : vector<8x128xf32> to vector<8x128xbf16>
    %c0_13 = arith.constant 0 : index
    %c0_14 = arith.constant 0 : index
    %18 = vector.load %arg5[%c0_13, %c0_14] : memref<128x512xbf16, #tpu.memory_space<vmem>>, vector<128x512xbf16>
    %cst_15 = arith.constant dense<0.000000e+00> : vector<8x512xf32>
    %19 = tpu.matmul %17, %18, %cst_15 {dimension_numbers = #tpu.dot_dimension_numbers<[1], [0], [0], [1], [0, 0, 1, 1], [], []>} : vector<8x128xbf16>, vector<128x512xbf16>, vector<8x512xf32> -> vector<8x512xf32>
    %20 = arith.addf %16, %19 : vector<8x512xf32>
    %21 = arith.addf %20, %5 : vector<8x512xf32>
    %22 = vector.extract_strided_slice %21 {offsets = [0, 0], sizes = [8, 128], strides = [1, 1]} : vector<8x512xf32> to vector<8x128xf32>
    %23 = arith.negf %22 : vector<8x128xf32>
    %24 = math.exp %23 : vector<8x128xf32>
    %cst_16 = arith.constant 1.000000e+00 : f32
    %25 = vector.broadcast %cst_16 : f32 to vector<8x128xf32>
    %26 = arith.addf %25, %24 : vector<8x128xf32>
    %27 = arith.divf %25, %26 : vector<8x128xf32>
    %28 = vector.extract_strided_slice %21 {offsets = [0, 128], sizes = [8, 128], strides = [1, 1]} : vector<8x512xf32> to vector<8x128xf32>
    %29 = arith.negf %28 : vector<8x128xf32>
    %30 = math.exp %29 : vector<8x128xf32>
    %cst_17 = arith.constant 1.000000e+00 : f32
    %31 = vector.broadcast %cst_17 : f32 to vector<8x128xf32>
    %32 = arith.addf %31, %30 : vector<8x128xf32>
    %33 = arith.divf %31, %32 : vector<8x128xf32>
    %34 = vector.extract_strided_slice %21 {offsets = [0, 256], sizes = [8, 128], strides = [1, 1]} : vector<8x512xf32> to vector<8x128xf32>
    %35 = math.tanh %34 : vector<8x128xf32>
    %36 = vector.extract_strided_slice %21 {offsets = [0, 384], sizes = [8, 128], strides = [1, 1]} : vector<8x512xf32> to vector<8x128xf32>
    %37 = arith.negf %36 : vector<8x128xf32>
    %38 = math.exp %37 : vector<8x128xf32>
    %cst_18 = arith.constant 1.000000e+00 : f32
    %39 = vector.broadcast %cst_18 : f32 to vector<8x128xf32>
    %40 = arith.addf %39, %38 : vector<8x128xf32>
    %41 = arith.divf %39, %40 : vector<8x128xf32>
    %42 = arith.mulf %33, %11 : vector<8x128xf32>
    %43 = arith.mulf %27, %35 : vector<8x128xf32>
    %44 = arith.addf %42, %43 : vector<8x128xf32>
    %45 = math.tanh %44 : vector<8x128xf32>
    %46 = arith.mulf %41, %45 : vector<8x128xf32>
    %47 = arith.addi %9, %c0_i32_8 : i32
    %48 = vector.broadcast %47 : i32 to vector<8x128xi32>
    %49 = arith.cmpi slt, %48, %8 : vector<8x128xi32>
    %50 = arith.select %49, %46, %10 : vector<8x128xi1>, vector<8x128xf32>
    %51 = arith.select %49, %44, %11 : vector<8x128xi1>, vector<8x128xf32>
    %c1_i32 = arith.constant 1 : i32
    %52 = arith.index_cast %c1_i32 : i32 to index
    %c0_19 = arith.constant 0 : index
    %c0_20 = arith.constant 0 : index
    %53 = vector.load %arg2[%52, %c0_19, %c0_20] : memref<8x8x16xbf16, #tpu.memory_space<vmem>>, vector<1x8x16xbf16>
    %54 = vector.shape_cast %53 : vector<1x8x16xbf16> to vector<8x16xbf16>
    %c0_21 = arith.constant 0 : index
    %c0_22 = arith.constant 0 : index
    %55 = vector.load %arg4[%c0_21, %c0_22] : memref<16x512xbf16, #tpu.memory_space<vmem>>, vector<16x512xbf16>
    %cst_23 = arith.constant dense<0.000000e+00> : vector<8x512xf32>
    %56 = tpu.matmul %54, %55, %cst_23 {dimension_numbers = #tpu.dot_dimension_numbers<[1], [0], [0], [1], [0, 0, 1, 1], [], []>} : vector<8x16xbf16>, vector<16x512xbf16>, vector<8x512xf32> -> vector<8x512xf32>
    %57 = arith.truncf %50 : vector<8x128xf32> to vector<8x128xbf16>
    %c0_24 = arith.constant 0 : index
    %c0_25 = arith.constant 0 : index
    %58 = vector.load %arg5[%c0_24, %c0_25] : memref<128x512xbf16, #tpu.memory_space<vmem>>, vector<128x512xbf16>
    %cst_26 = arith.constant dense<0.000000e+00> : vector<8x512xf32>
    %59 = tpu.matmul %57, %58, %cst_26 {dimension_numbers = #tpu.dot_dimension_numbers<[1], [0], [0], [1], [0, 0, 1, 1], [], []>} : vector<8x128xbf16>, vector<128x512xbf16>, vector<8x512xf32> -> vector<8x512xf32>
    %60 = arith.addf %56, %59 : vector<8x512xf32>
    %61 = arith.addf %60, %5 : vector<8x512xf32>
    %62 = vector.extract_strided_slice %61 {offsets = [0, 0], sizes = [8, 128], strides = [1, 1]} : vector<8x512xf32> to vector<8x128xf32>
    %63 = arith.negf %62 : vector<8x128xf32>
    %64 = math.exp %63 : vector<8x128xf32>
    %cst_27 = arith.constant 1.000000e+00 : f32
    %65 = vector.broadcast %cst_27 : f32 to vector<8x128xf32>
    %66 = arith.addf %65, %64 : vector<8x128xf32>
    %67 = arith.divf %65, %66 : vector<8x128xf32>
    %68 = vector.extract_strided_slice %61 {offsets = [0, 128], sizes = [8, 128], strides = [1, 1]} : vector<8x512xf32> to vector<8x128xf32>
    %69 = arith.negf %68 : vector<8x128xf32>
    %70 = math.exp %69 : vector<8x128xf32>
    %cst_28 = arith.constant 1.000000e+00 : f32
    %71 = vector.broadcast %cst_28 : f32 to vector<8x128xf32>
    %72 = arith.addf %71, %70 : vector<8x128xf32>
    %73 = arith.divf %71, %72 : vector<8x128xf32>
    %74 = vector.extract_strided_slice %61 {offsets = [0, 256], sizes = [8, 128], strides = [1, 1]} : vector<8x512xf32> to vector<8x128xf32>
    %75 = math.tanh %74 : vector<8x128xf32>
    %76 = vector.extract_strided_slice %61 {offsets = [0, 384], sizes = [8, 128], strides = [1, 1]} : vector<8x512xf32> to vector<8x128xf32>
    %77 = arith.negf %76 : vector<8x128xf32>
    %78 = math.exp %77 : vector<8x128xf32>
    %cst_29 = arith.constant 1.000000e+00 : f32
    %79 = vector.broadcast %cst_29 : f32 to vector<8x128xf32>
    %80 = arith.addf %79, %78 : vector<8x128xf32>
    %81 = arith.divf %79, %80 : vector<8x128xf32>
    %82 = arith.mulf %73, %51 : vector<8x128xf32>
    %83 = arith.mulf %67, %75 : vector<8x128xf32>
    %84 = arith.addf %82, %83 : vector<8x128xf32>
    %85 = math.tanh %84 : vector<8x128xf32>
    %86 = arith.mulf %81, %85 : vector<8x128xf32>
    %87 = arith.addi %9, %c1_i32 : i32
    %88 = vector.broadcast %87 : i32 to vector<8x128xi32>
    %89 = arith.cmpi slt, %88, %8 : vector<8x128xi32>
    %90 = arith.select %89, %86, %50 : vector<8x128xi1>, vector<8x128xf32>
    %91 = arith.select %89, %84, %51 : vector<8x128xi1>, vector<8x128xf32>
    %c2_i32 = arith.constant 2 : i32
    %92 = arith.index_cast %c2_i32 : i32 to index
    %c0_30 = arith.constant 0 : index
    %c0_31 = arith.constant 0 : index
    %93 = vector.load %arg2[%92, %c0_30, %c0_31] : memref<8x8x16xbf16, #tpu.memory_space<vmem>>, vector<1x8x16xbf16>
    %94 = vector.shape_cast %93 : vector<1x8x16xbf16> to vector<8x16xbf16>
    %c0_32 = arith.constant 0 : index
    %c0_33 = arith.constant 0 : index
    %95 = vector.load %arg4[%c0_32, %c0_33] : memref<16x512xbf16, #tpu.memory_space<vmem>>, vector<16x512xbf16>
    %cst_34 = arith.constant dense<0.000000e+00> : vector<8x512xf32>
    %96 = tpu.matmul %94, %95, %cst_34 {dimension_numbers = #tpu.dot_dimension_numbers<[1], [0], [0], [1], [0, 0, 1, 1], [], []>} : vector<8x16xbf16>, vector<16x512xbf16>, vector<8x512xf32> -> vector<8x512xf32>
    %97 = arith.truncf %90 : vector<8x128xf32> to vector<8x128xbf16>
    %c0_35 = arith.constant 0 : index
    %c0_36 = arith.constant 0 : index
    %98 = vector.load %arg5[%c0_35, %c0_36] : memref<128x512xbf16, #tpu.memory_space<vmem>>, vector<128x512xbf16>
    %cst_37 = arith.constant dense<0.000000e+00> : vector<8x512xf32>
    %99 = tpu.matmul %97, %98, %cst_37 {dimension_numbers = #tpu.dot_dimension_numbers<[1], [0], [0], [1], [0, 0, 1, 1], [], []>} : vector<8x128xbf16>, vector<128x512xbf16>, vector<8x512xf32> -> vector<8x512xf32>
    %100 = arith.addf %96, %99 : vector<8x512xf32>
    %101 = arith.addf %100, %5 : vector<8x512xf32>
    %102 = vector.extract_strided_slice %101 {offsets = [0, 0], sizes = [8, 128], strides = [1, 1]} : vector<8x512xf32> to vector<8x128xf32>
    %103 = arith.negf %102 : vector<8x128xf32>
    %104 = math.exp %103 : vector<8x128xf32>
    %cst_38 = arith.constant 1.000000e+00 : f32
    %105 = vector.broadcast %cst_38 : f32 to vector<8x128xf32>
    %106 = arith.addf %105, %104 : vector<8x128xf32>
    %107 = arith.divf %105, %106 : vector<8x128xf32>
    %108 = vector.extract_strided_slice %101 {offsets = [0, 128], sizes = [8, 128], strides = [1, 1]} : vector<8x512xf32> to vector<8x128xf32>
    %109 = arith.negf %108 : vector<8x128xf32>
    %110 = math.exp %109 : vector<8x128xf32>
    %cst_39 = arith.constant 1.000000e+00 : f32
    %111 = vector.broadcast %cst_39 : f32 to vector<8x128xf32>
    %112 = arith.addf %111, %110 : vector<8x128xf32>
    %113 = arith.divf %111, %112 : vector<8x128xf32>
    %114 = vector.extract_strided_slice %101 {offsets = [0, 256], sizes = [8, 128], strides = [1, 1]} : vector<8x512xf32> to vector<8x128xf32>
    %115 = math.tanh %114 : vector<8x128xf32>
    %116 = vector.extract_strided_slice %101 {offsets = [0, 384], sizes = [8, 128], strides = [1, 1]} : vector<8x512xf32> to vector<8x128xf32>
    %117 = arith.negf %116 : vector<8x128xf32>
    %118 = math.exp %117 : vector<8x128xf32>
    %cst_40 = arith.constant 1.000000e+00 : f32
    %119 = vector.broadcast %cst_40 : f32 to vector<8x128xf32>
    %120 = arith.addf %119, %118 : vector<8x128xf32>
    %121 = arith.divf %119, %120 : vector<8x128xf32>
    %122 = arith.mulf %113, %91 : vector<8x128xf32>
    %123 = arith.mulf %107, %115 : vector<8x128xf32>
    %124 = arith.addf %122, %123 : vector<8x128xf32>
    %125 = math.tanh %124 : vector<8x128xf32>
    %126 = arith.mulf %121, %125 : vector<8x128xf32>
    %127 = arith.addi %9, %c2_i32 : i32
    %128 = vector.broadcast %127 : i32 to vector<8x128xi32>
    %129 = arith.cmpi slt, %128, %8 : vector<8x128xi32>
    %130 = arith.select %129, %126, %90 : vector<8x128xi1>, vector<8x128xf32>
    %131 = arith.select %129, %124, %91 : vector<8x128xi1>, vector<8x128xf32>
    %c3_i32 = arith.constant 3 : i32
    %132 = arith.index_cast %c3_i32 : i32 to index
    %c0_41 = arith.constant 0 : index
    %c0_42 = arith.constant 0 : index
    %133 = vector.load %arg2[%132, %c0_41, %c0_42] : memref<8x8x16xbf16, #tpu.memory_space<vmem>>, vector<1x8x16xbf16>
    %134 = vector.shape_cast %133 : vector<1x8x16xbf16> to vector<8x16xbf16>
    %c0_43 = arith.constant 0 : index
    %c0_44 = arith.constant 0 : index
    %135 = vector.load %arg4[%c0_43, %c0_44] : memref<16x512xbf16, #tpu.memory_space<vmem>>, vector<16x512xbf16>
    %cst_45 = arith.constant dense<0.000000e+00> : vector<8x512xf32>
    %136 = tpu.matmul %134, %135, %cst_45 {dimension_numbers = #tpu.dot_dimension_numbers<[1], [0], [0], [1], [0, 0, 1, 1], [], []>} : vector<8x16xbf16>, vector<16x512xbf16>, vector<8x512xf32> -> vector<8x512xf32>
    %137 = arith.truncf %130 : vector<8x128xf32> to vector<8x128xbf16>
    %c0_46 = arith.constant 0 : index
    %c0_47 = arith.constant 0 : index
    %138 = vector.load %arg5[%c0_46, %c0_47] : memref<128x512xbf16, #tpu.memory_space<vmem>>, vector<128x512xbf16>
    %cst_48 = arith.constant dense<0.000000e+00> : vector<8x512xf32>
    %139 = tpu.matmul %137, %138, %cst_48 {dimension_numbers = #tpu.dot_dimension_numbers<[1], [0], [0], [1], [0, 0, 1, 1], [], []>} : vector<8x128xbf16>, vector<128x512xbf16>, vector<8x512xf32> -> vector<8x512xf32>
    %140 = arith.addf %136, %139 : vector<8x512xf32>
    %141 = arith.addf %140, %5 : vector<8x512xf32>
    %142 = vector.extract_strided_slice %141 {offsets = [0, 0], sizes = [8, 128], strides = [1, 1]} : vector<8x512xf32> to vector<8x128xf32>
    %143 = arith.negf %142 : vector<8x128xf32>
    %144 = math.exp %143 : vector<8x128xf32>
    %cst_49 = arith.constant 1.000000e+00 : f32
    %145 = vector.broadcast %cst_49 : f32 to vector<8x128xf32>
    %146 = arith.addf %145, %144 : vector<8x128xf32>
    %147 = arith.divf %145, %146 : vector<8x128xf32>
    %148 = vector.extract_strided_slice %141 {offsets = [0, 128], sizes = [8, 128], strides = [1, 1]} : vector<8x512xf32> to vector<8x128xf32>
    %149 = arith.negf %148 : vector<8x128xf32>
    %150 = math.exp %149 : vector<8x128xf32>
    %cst_50 = arith.constant 1.000000e+00 : f32
    %151 = vector.broadcast %cst_50 : f32 to vector<8x128xf32>
    %152 = arith.addf %151, %150 : vector<8x128xf32>
    %153 = arith.divf %151, %152 : vector<8x128xf32>
    %154 = vector.extract_strided_slice %141 {offsets = [0, 256], sizes = [8, 128], strides = [1, 1]} : vector<8x512xf32> to vector<8x128xf32>
    %155 = math.tanh %154 : vector<8x128xf32>
    %156 = vector.extract_strided_slice %141 {offsets = [0, 384], sizes = [8, 128], strides = [1, 1]} : vector<8x512xf32> to vector<8x128xf32>
    %157 = arith.negf %156 : vector<8x128xf32>
    %158 = math.exp %157 : vector<8x128xf32>
    %cst_51 = arith.constant 1.000000e+00 : f32
    %159 = vector.broadcast %cst_51 : f32 to vector<8x128xf32>
    %160 = arith.addf %159, %158 : vector<8x128xf32>
    %161 = arith.divf %159, %160 : vector<8x128xf32>
    %162 = arith.mulf %153, %131 : vector<8x128xf32>
    %163 = arith.mulf %147, %155 : vector<8x128xf32>
    %164 = arith.addf %162, %163 : vector<8x128xf32>
    %165 = math.tanh %164 : vector<8x128xf32>
    %166 = arith.mulf %161, %165 : vector<8x128xf32>
    %167 = arith.addi %9, %c3_i32 : i32
    %168 = vector.broadcast %167 : i32 to vector<8x128xi32>
    %169 = arith.cmpi slt, %168, %8 : vector<8x128xi32>
    %170 = arith.select %169, %166, %130 : vector<8x128xi1>, vector<8x128xf32>
    %171 = arith.select %169, %164, %131 : vector<8x128xi1>, vector<8x128xf32>
    %c4_i32 = arith.constant 4 : i32
    %172 = arith.index_cast %c4_i32 : i32 to index
    %c0_52 = arith.constant 0 : index
    %c0_53 = arith.constant 0 : index
    %173 = vector.load %arg2[%172, %c0_52, %c0_53] : memref<8x8x16xbf16, #tpu.memory_space<vmem>>, vector<1x8x16xbf16>
    %174 = vector.shape_cast %173 : vector<1x8x16xbf16> to vector<8x16xbf16>
    %c0_54 = arith.constant 0 : index
    %c0_55 = arith.constant 0 : index
    %175 = vector.load %arg4[%c0_54, %c0_55] : memref<16x512xbf16, #tpu.memory_space<vmem>>, vector<16x512xbf16>
    %cst_56 = arith.constant dense<0.000000e+00> : vector<8x512xf32>
    %176 = tpu.matmul %174, %175, %cst_56 {dimension_numbers = #tpu.dot_dimension_numbers<[1], [0], [0], [1], [0, 0, 1, 1], [], []>} : vector<8x16xbf16>, vector<16x512xbf16>, vector<8x512xf32> -> vector<8x512xf32>
    %177 = arith.truncf %170 : vector<8x128xf32> to vector<8x128xbf16>
    %c0_57 = arith.constant 0 : index
    %c0_58 = arith.constant 0 : index
    %178 = vector.load %arg5[%c0_57, %c0_58] : memref<128x512xbf16, #tpu.memory_space<vmem>>, vector<128x512xbf16>
    %cst_59 = arith.constant dense<0.000000e+00> : vector<8x512xf32>
    %179 = tpu.matmul %177, %178, %cst_59 {dimension_numbers = #tpu.dot_dimension_numbers<[1], [0], [0], [1], [0, 0, 1, 1], [], []>} : vector<8x128xbf16>, vector<128x512xbf16>, vector<8x512xf32> -> vector<8x512xf32>
    %180 = arith.addf %176, %179 : vector<8x512xf32>
    %181 = arith.addf %180, %5 : vector<8x512xf32>
    %182 = vector.extract_strided_slice %181 {offsets = [0, 0], sizes = [8, 128], strides = [1, 1]} : vector<8x512xf32> to vector<8x128xf32>
    %183 = arith.negf %182 : vector<8x128xf32>
    %184 = math.exp %183 : vector<8x128xf32>
    %cst_60 = arith.constant 1.000000e+00 : f32
    %185 = vector.broadcast %cst_60 : f32 to vector<8x128xf32>
    %186 = arith.addf %185, %184 : vector<8x128xf32>
    %187 = arith.divf %185, %186 : vector<8x128xf32>
    %188 = vector.extract_strided_slice %181 {offsets = [0, 128], sizes = [8, 128], strides = [1, 1]} : vector<8x512xf32> to vector<8x128xf32>
    %189 = arith.negf %188 : vector<8x128xf32>
    %190 = math.exp %189 : vector<8x128xf32>
    %cst_61 = arith.constant 1.000000e+00 : f32
    %191 = vector.broadcast %cst_61 : f32 to vector<8x128xf32>
    %192 = arith.addf %191, %190 : vector<8x128xf32>
    %193 = arith.divf %191, %192 : vector<8x128xf32>
    %194 = vector.extract_strided_slice %181 {offsets = [0, 256], sizes = [8, 128], strides = [1, 1]} : vector<8x512xf32> to vector<8x128xf32>
    %195 = math.tanh %194 : vector<8x128xf32>
    %196 = vector.extract_strided_slice %181 {offsets = [0, 384], sizes = [8, 128], strides = [1, 1]} : vector<8x512xf32> to vector<8x128xf32>
    %197 = arith.negf %196 : vector<8x128xf32>
    %198 = math.exp %197 : vector<8x128xf32>
    %cst_62 = arith.constant 1.000000e+00 : f32
    %199 = vector.broadcast %cst_62 : f32 to vector<8x128xf32>
    %200 = arith.addf %199, %198 : vector<8x128xf32>
    %201 = arith.divf %199, %200 : vector<8x128xf32>
    %202 = arith.mulf %193, %171 : vector<8x128xf32>
    %203 = arith.mulf %187, %195 : vector<8x128xf32>
    %204 = arith.addf %202, %203 : vector<8x128xf32>
    %205 = math.tanh %204 : vector<8x128xf32>
    %206 = arith.mulf %201, %205 : vector<8x128xf32>
    %207 = arith.addi %9, %c4_i32 : i32
    %208 = vector.broadcast %207 : i32 to vector<8x128xi32>
    %209 = arith.cmpi slt, %208, %8 : vector<8x128xi32>
    %210 = arith.select %209, %206, %170 : vector<8x128xi1>, vector<8x128xf32>
    %211 = arith.select %209, %204, %171 : vector<8x128xi1>, vector<8x128xf32>
    %c5_i32 = arith.constant 5 : i32
    %212 = arith.index_cast %c5_i32 : i32 to index
    %c0_63 = arith.constant 0 : index
    %c0_64 = arith.constant 0 : index
    %213 = vector.load %arg2[%212, %c0_63, %c0_64] : memref<8x8x16xbf16, #tpu.memory_space<vmem>>, vector<1x8x16xbf16>
    %214 = vector.shape_cast %213 : vector<1x8x16xbf16> to vector<8x16xbf16>
    %c0_65 = arith.constant 0 : index
    %c0_66 = arith.constant 0 : index
    %215 = vector.load %arg4[%c0_65, %c0_66] : memref<16x512xbf16, #tpu.memory_space<vmem>>, vector<16x512xbf16>
    %cst_67 = arith.constant dense<0.000000e+00> : vector<8x512xf32>
    %216 = tpu.matmul %214, %215, %cst_67 {dimension_numbers = #tpu.dot_dimension_numbers<[1], [0], [0], [1], [0, 0, 1, 1], [], []>} : vector<8x16xbf16>, vector<16x512xbf16>, vector<8x512xf32> -> vector<8x512xf32>
    %217 = arith.truncf %210 : vector<8x128xf32> to vector<8x128xbf16>
    %c0_68 = arith.constant 0 : index
    %c0_69 = arith.constant 0 : index
    %218 = vector.load %arg5[%c0_68, %c0_69] : memref<128x512xbf16, #tpu.memory_space<vmem>>, vector<128x512xbf16>
    %cst_70 = arith.constant dense<0.000000e+00> : vector<8x512xf32>
    %219 = tpu.matmul %217, %218, %cst_70 {dimension_numbers = #tpu.dot_dimension_numbers<[1], [0], [0], [1], [0, 0, 1, 1], [], []>} : vector<8x128xbf16>, vector<128x512xbf16>, vector<8x512xf32> -> vector<8x512xf32>
    %220 = arith.addf %216, %219 : vector<8x512xf32>
    %221 = arith.addf %220, %5 : vector<8x512xf32>
    %222 = vector.extract_strided_slice %221 {offsets = [0, 0], sizes = [8, 128], strides = [1, 1]} : vector<8x512xf32> to vector<8x128xf32>
    %223 = arith.negf %222 : vector<8x128xf32>
    %224 = math.exp %223 : vector<8x128xf32>
    %cst_71 = arith.constant 1.000000e+00 : f32
    %225 = vector.broadcast %cst_71 : f32 to vector<8x128xf32>
    %226 = arith.addf %225, %224 : vector<8x128xf32>
    %227 = arith.divf %225, %226 : vector<8x128xf32>
    %228 = vector.extract_strided_slice %221 {offsets = [0, 128], sizes = [8, 128], strides = [1, 1]} : vector<8x512xf32> to vector<8x128xf32>
    %229 = arith.negf %228 : vector<8x128xf32>
    %230 = math.exp %229 : vector<8x128xf32>
    %cst_72 = arith.constant 1.000000e+00 : f32
    %231 = vector.broadcast %cst_72 : f32 to vector<8x128xf32>
    %232 = arith.addf %231, %230 : vector<8x128xf32>
    %233 = arith.divf %231, %232 : vector<8x128xf32>
    %234 = vector.extract_strided_slice %221 {offsets = [0, 256], sizes = [8, 128], strides = [1, 1]} : vector<8x512xf32> to vector<8x128xf32>
    %235 = math.tanh %234 : vector<8x128xf32>
    %236 = vector.extract_strided_slice %221 {offsets = [0, 384], sizes = [8, 128], strides = [1, 1]} : vector<8x512xf32> to vector<8x128xf32>
    %237 = arith.negf %236 : vector<8x128xf32>
    %238 = math.exp %237 : vector<8x128xf32>
    %cst_73 = arith.constant 1.000000e+00 : f32
    %239 = vector.broadcast %cst_73 : f32 to vector<8x128xf32>
    %240 = arith.addf %239, %238 : vector<8x128xf32>
    %241 = arith.divf %239, %240 : vector<8x128xf32>
    %242 = arith.mulf %233, %211 : vector<8x128xf32>
    %243 = arith.mulf %227, %235 : vector<8x128xf32>
    %244 = arith.addf %242, %243 : vector<8x128xf32>
    %245 = math.tanh %244 : vector<8x128xf32>
    %246 = arith.mulf %241, %245 : vector<8x128xf32>
    %247 = arith.addi %9, %c5_i32 : i32
    %248 = vector.broadcast %247 : i32 to vector<8x128xi32>
    %249 = arith.cmpi slt, %248, %8 : vector<8x128xi32>
    %250 = arith.select %249, %246, %210 : vector<8x128xi1>, vector<8x128xf32>
    %251 = arith.select %249, %244, %211 : vector<8x128xi1>, vector<8x128xf32>
    %c6_i32 = arith.constant 6 : i32
    %252 = arith.index_cast %c6_i32 : i32 to index
    %c0_74 = arith.constant 0 : index
    %c0_75 = arith.constant 0 : index
    %253 = vector.load %arg2[%252, %c0_74, %c0_75] : memref<8x8x16xbf16, #tpu.memory_space<vmem>>, vector<1x8x16xbf16>
    %254 = vector.shape_cast %253 : vector<1x8x16xbf16> to vector<8x16xbf16>
    %c0_76 = arith.constant 0 : index
    %c0_77 = arith.constant 0 : index
    %255 = vector.load %arg4[%c0_76, %c0_77] : memref<16x512xbf16, #tpu.memory_space<vmem>>, vector<16x512xbf16>
    %cst_78 = arith.constant dense<0.000000e+00> : vector<8x512xf32>
    %256 = tpu.matmul %254, %255, %cst_78 {dimension_numbers = #tpu.dot_dimension_numbers<[1], [0], [0], [1], [0, 0, 1, 1], [], []>} : vector<8x16xbf16>, vector<16x512xbf16>, vector<8x512xf32> -> vector<8x512xf32>
    %257 = arith.truncf %250 : vector<8x128xf32> to vector<8x128xbf16>
    %c0_79 = arith.constant 0 : index
    %c0_80 = arith.constant 0 : index
    %258 = vector.load %arg5[%c0_79, %c0_80] : memref<128x512xbf16, #tpu.memory_space<vmem>>, vector<128x512xbf16>
    %cst_81 = arith.constant dense<0.000000e+00> : vector<8x512xf32>
    %259 = tpu.matmul %257, %258, %cst_81 {dimension_numbers = #tpu.dot_dimension_numbers<[1], [0], [0], [1], [0, 0, 1, 1], [], []>} : vector<8x128xbf16>, vector<128x512xbf16>, vector<8x512xf32> -> vector<8x512xf32>
    %260 = arith.addf %256, %259 : vector<8x512xf32>
    %261 = arith.addf %260, %5 : vector<8x512xf32>
    %262 = vector.extract_strided_slice %261 {offsets = [0, 0], sizes = [8, 128], strides = [1, 1]} : vector<8x512xf32> to vector<8x128xf32>
    %263 = arith.negf %262 : vector<8x128xf32>
    %264 = math.exp %263 : vector<8x128xf32>
    %cst_82 = arith.constant 1.000000e+00 : f32
    %265 = vector.broadcast %cst_82 : f32 to vector<8x128xf32>
    %266 = arith.addf %265, %264 : vector<8x128xf32>
    %267 = arith.divf %265, %266 : vector<8x128xf32>
    %268 = vector.extract_strided_slice %261 {offsets = [0, 128], sizes = [8, 128], strides = [1, 1]} : vector<8x512xf32> to vector<8x128xf32>
    %269 = arith.negf %268 : vector<8x128xf32>
    %270 = math.exp %269 : vector<8x128xf32>
    %cst_83 = arith.constant 1.000000e+00 : f32
    %271 = vector.broadcast %cst_83 : f32 to vector<8x128xf32>
    %272 = arith.addf %271, %270 : vector<8x128xf32>
    %273 = arith.divf %271, %272 : vector<8x128xf32>
    %274 = vector.extract_strided_slice %261 {offsets = [0, 256], sizes = [8, 128], strides = [1, 1]} : vector<8x512xf32> to vector<8x128xf32>
    %275 = math.tanh %274 : vector<8x128xf32>
    %276 = vector.extract_strided_slice %261 {offsets = [0, 384], sizes = [8, 128], strides = [1, 1]} : vector<8x512xf32> to vector<8x128xf32>
    %277 = arith.negf %276 : vector<8x128xf32>
    %278 = math.exp %277 : vector<8x128xf32>
    %cst_84 = arith.constant 1.000000e+00 : f32
    %279 = vector.broadcast %cst_84 : f32 to vector<8x128xf32>
    %280 = arith.addf %279, %278 : vector<8x128xf32>
    %281 = arith.divf %279, %280 : vector<8x128xf32>
    %282 = arith.mulf %273, %251 : vector<8x128xf32>
    %283 = arith.mulf %267, %275 : vector<8x128xf32>
    %284 = arith.addf %282, %283 : vector<8x128xf32>
    %285 = math.tanh %284 : vector<8x128xf32>
    %286 = arith.mulf %281, %285 : vector<8x128xf32>
    %287 = arith.addi %9, %c6_i32 : i32
    %288 = vector.broadcast %287 : i32 to vector<8x128xi32>
    %289 = arith.cmpi slt, %288, %8 : vector<8x128xi32>
    %290 = arith.select %289, %286, %250 : vector<8x128xi1>, vector<8x128xf32>
    %291 = arith.select %289, %284, %251 : vector<8x128xi1>, vector<8x128xf32>
    %c7_i32 = arith.constant 7 : i32
    %292 = arith.index_cast %c7_i32 : i32 to index
    %c0_85 = arith.constant 0 : index
    %c0_86 = arith.constant 0 : index
    %293 = vector.load %arg2[%292, %c0_85, %c0_86] : memref<8x8x16xbf16, #tpu.memory_space<vmem>>, vector<1x8x16xbf16>
    %294 = vector.shape_cast %293 : vector<1x8x16xbf16> to vector<8x16xbf16>
    %c0_87 = arith.constant 0 : index
    %c0_88 = arith.constant 0 : index
    %295 = vector.load %arg4[%c0_87, %c0_88] : memref<16x512xbf16, #tpu.memory_space<vmem>>, vector<16x512xbf16>
    %cst_89 = arith.constant dense<0.000000e+00> : vector<8x512xf32>
    %296 = tpu.matmul %294, %295, %cst_89 {dimension_numbers = #tpu.dot_dimension_numbers<[1], [0], [0], [1], [0, 0, 1, 1], [], []>} : vector<8x16xbf16>, vector<16x512xbf16>, vector<8x512xf32> -> vector<8x512xf32>
    %297 = arith.truncf %290 : vector<8x128xf32> to vector<8x128xbf16>
    %c0_90 = arith.constant 0 : index
    %c0_91 = arith.constant 0 : index
    %298 = vector.load %arg5[%c0_90, %c0_91] : memref<128x512xbf16, #tpu.memory_space<vmem>>, vector<128x512xbf16>
    %cst_92 = arith.constant dense<0.000000e+00> : vector<8x512xf32>
    %299 = tpu.matmul %297, %298, %cst_92 {dimension_numbers = #tpu.dot_dimension_numbers<[1], [0], [0], [1], [0, 0, 1, 1], [], []>} : vector<8x128xbf16>, vector<128x512xbf16>, vector<8x512xf32> -> vector<8x512xf32>
    %300 = arith.addf %296, %299 : vector<8x512xf32>
    %301 = arith.addf %300, %5 : vector<8x512xf32>
    %302 = vector.extract_strided_slice %301 {offsets = [0, 0], sizes = [8, 128], strides = [1, 1]} : vector<8x512xf32> to vector<8x128xf32>
    %303 = arith.negf %302 : vector<8x128xf32>
    %304 = math.exp %303 : vector<8x128xf32>
    %cst_93 = arith.constant 1.000000e+00 : f32
    %305 = vector.broadcast %cst_93 : f32 to vector<8x128xf32>
    %306 = arith.addf %305, %304 : vector<8x128xf32>
    %307 = arith.divf %305, %306 : vector<8x128xf32>
    %308 = vector.extract_strided_slice %301 {offsets = [0, 128], sizes = [8, 128], strides = [1, 1]} : vector<8x512xf32> to vector<8x128xf32>
    %309 = arith.negf %308 : vector<8x128xf32>
    %310 = math.exp %309 : vector<8x128xf32>
    %cst_94 = arith.constant 1.000000e+00 : f32
    %311 = vector.broadcast %cst_94 : f32 to vector<8x128xf32>
    %312 = arith.addf %311, %310 : vector<8x128xf32>
    %313 = arith.divf %311, %312 : vector<8x128xf32>
    %314 = vector.extract_strided_slice %301 {offsets = [0, 256], sizes = [8, 128], strides = [1, 1]} : vector<8x512xf32> to vector<8x128xf32>
    %315 = math.tanh %314 : vector<8x128xf32>
    %316 = vector.extract_strided_slice %301 {offsets = [0, 384], sizes = [8, 128], strides = [1, 1]} : vector<8x512xf32> to vector<8x128xf32>
    %317 = arith.negf %316 : vector<8x128xf32>
    %318 = math.exp %317 : vector<8x128xf32>
    %cst_95 = arith.constant 1.000000e+00 : f32
    %319 = vector.broadcast %cst_95 : f32 to vector<8x128xf32>
    %320 = arith.addf %319, %318 : vector<8x128xf32>
    %321 = arith.divf %319, %320 : vector<8x128xf32>
    %322 = arith.mulf %313, %291 : vector<8x128xf32>
    %323 = arith.mulf %307, %315 : vector<8x128xf32>
    %324 = arith.addf %322, %323 : vector<8x128xf32>
    %325 = math.tanh %324 : vector<8x128xf32>
    %326 = arith.mulf %321, %325 : vector<8x128xf32>
    %327 = arith.addi %9, %c7_i32 : i32
    %328 = vector.broadcast %327 : i32 to vector<8x128xi32>
    %329 = arith.cmpi slt, %328, %8 : vector<8x128xi32>
    %330 = arith.select %329, %326, %290 : vector<8x128xi1>, vector<8x128xf32>
    %331 = arith.select %329, %324, %291 : vector<8x128xi1>, vector<8x128xf32>
    %c8_i32_96 = arith.constant 8 : i32
    %c0_97 = arith.constant 0 : index
    %c0_98 = arith.constant 0 : index
    %332 = vector.load %arg8[%c0_97, %c0_98] : memref<8x128xf32, #tpu.memory_space<vmem>>, vector<8x128xf32>
    tpu.vector_store %arg8[%c0_97, %c0_98], %330 {strides = array<i32>} : memref<8x128xf32, #tpu.memory_space<vmem>>, vector<8x128xf32>,
    %c0_99 = arith.constant 0 : index
    %c0_100 = arith.constant 0 : index
    %333 = vector.load %arg9[%c0_99, %c0_100] : memref<8x128xf32, #tpu.memory_space<vmem>>, vector<8x128xf32>
    tpu.vector_store %arg9[%c0_99, %c0_100], %331 {strides = array<i32>} : memref<8x128xf32, #tpu.memory_space<vmem>>, vector<8x128xf32>,
    %c1_i32_101 = arith.constant 1 : i32
    %334 = arith.cmpi eq, %arg1, %c1_i32_101 : i32
    %335 = arith.extui %334 : i1 to i32
    %c0_i32_102 = arith.constant 0 : i32
    %336 = arith.cmpi ne, %335, %c0_i32_102 : i32
    scf.if %336 {
      %c0_103 = arith.constant 0 : index
      %c0_104 = arith.constant 0 : index
      %337 = vector.load %arg7[%c0_103, %c0_104] : memref<8x128xf32, #tpu.memory_space<vmem>>, vector<8x128xf32>
      tpu.vector_store %arg7[%c0_103, %c0_104], %330 {strides = array<i32>} : memref<8x128xf32, #tpu.memory_space<vmem>>, vector<8x128xf32>,
    } else {
    }
    return
  }
  func.func @transform_0(%arg0: i32, %arg1: i32) -> (i32, i32, i32) {
    %c0_i32 = arith.constant 0 : i32
    %c0_i32_0 = arith.constant 0 : i32
    return %arg1, %arg0, %c0_i32 : i32, i32, i32
  }
  func.func @transform_1(%arg0: i32, %arg1: i32) -> (i32, i32) {
    %c0_i32 = arith.constant 0 : i32
    %c0_i32_0 = arith.constant 0 : i32
    return %arg0, %c0_i32 : i32, i32
  }
  func.func @transform_2(%arg0: i32, %arg1: i32) -> (i32, i32) {
    %c0_i32 = arith.constant 0 : i32
    %c0_i32_0 = arith.constant 0 : i32
    %c0_i32_1 = arith.constant 0 : i32
    return %c0_i32, %c0_i32_0 : i32, i32
  }
  func.func @transform_3(%arg0: i32, %arg1: i32) -> (i32, i32) {
    %c0_i32 = arith.constant 0 : i32
    %c0_i32_0 = arith.constant 0 : i32
    %c0_i32_1 = arith.constant 0 : i32
    return %c0_i32, %c0_i32_0 : i32, i32
  }
  func.func @transform_4(%arg0: i32, %arg1: i32) -> (i32, i32) {
    %c0_i32 = arith.constant 0 : i32
    %c0_i32_0 = arith.constant 0 : i32
    %c0_i32_1 = arith.constant 0 : i32
    return %c0_i32, %c0_i32_0 : i32, i32
  }
  func.func @transform_5(%arg0: i32, %arg1: i32) -> (i32, i32) {
    %c0_i32 = arith.constant 0 : i32
    %c0_i32_0 = arith.constant 0 : i32
    return %arg0, %c0_i32 : i32, i32
  }
}

</mosaic_0001>

<bundles_post_ra>
// kernel: tpu_custom_call.1
= control target key start
LH: loop header
LB: loop body
LE: loop exit
PB: predicated region body
PF: predicated region fallthrough
CT: control target
= control target key end

     0   :  { %10 = vsyncpa [#allocation5], 0  ;;  %s3741_s0 = inlined_call_operand.hbm [shape: bf16[16,8,16], index: 0, kind: input, shape index: {}]   ;;  %s3742_s1 = inlined_call_operand.vmem [shape: s32[8,1], index: 1, kind: input, shape index: {}]   ;;  %s3743_s2 = inlined_call_operand.hbm [shape: bf16[16,512], index: 2, kind: input, shape index: {}]   ;;  %s3744_s3 = inlined_call_operand.hbm [shape: bf16[128,512], index: 3, kind: input, shape index: {}]   ;;  %s3745_s4 = inlined_call_operand.vmem [shape: f32[1,512], index: 4, kind: input, shape index: {}]   ;;  %s3746_s5 = inlined_call_operand.hbm [shape: f32[8,128], index: 5, kind: output, shape index: {}]  }
   0x1   :  { %12 = vsyncpa [#allocation5 + $0x1], 0 }
   0x2   :  { %13 = vsyncpa [#allocation8], 0 }
   0x3   :  { %14 = vsyncpa [#allocation6], 0  ;;  %s2902_s18 = smov 0   ;;  %s2904_s19 = smov 0  }
   0x4   :  { %s2906_s20 = smov 0   ;;  %s2908_s21 = smov 0  }
   0x5   :  { %s2910_s22 = smov 0   ;;  %s2912_s23 = smov 0  }
   0x6 LB: > { %s2286_s24 = sadd.s32 4294967295, %s2860_s23   ;;  %p54_p0 = scmp.ne.s32.totalorder %s2844_s19, %s2840_s18  ;;  %s2860_s23 = sphi %s2912_s23, %s20_s23   ;;  %s2856_s22 = sphi %s2910_s22, %s3807_s22   ;;  %s2852_s21 = sphi %s2908_s21, %s3806_s21   ;;  %s2848_s20 = sphi %s2906_s20, %s3805_s20   ;;  %s2844_s19 = sphi %s2904_s19, %s3804_s19   ;;  %s2840_s18 = sphi %s2902_s18, %s3803_s18  }
   0x7   : > { %p2934_p1 = scmp.eq.s32.totalorder %s2286_s24, 0  ;;  %p2287_p2 = scmp.ge.s32.totalorder %s2860_s23, 1 }
   0x8   : > { %p180_p3 = scmp.lt.s32.totalorder %s2860_s23, 3  ;;  %s2862_s28 = smov [#allocation7]  }
   0x9   : > { %s3771_s25 = scalar_select %p2934_p1, 1, 0 }
   0xa   : > { %p2942_p4 = por %p2934_p1, %p54_p0  ;;  %p2946_p5 = pnand %p2287_p2, %p180_p3 }
   0xb   : > { %s199_s29 = sshll.u32 %s2862_s28, 4  ;;  %s2863_s6 = smov [#allocation9]   ;;  %s200_s29 = int_to_ptr.vmem [resolvable:$true] %s199_s29 }
   0xc   : > { %p2404_p6 = pneg %p2946_p5  ;;  %s212_s7 = sshll.u32 %s2863_s6, 4  ;;  %s213_s7 = int_to_ptr.vmem [resolvable:$true] %s212_s7 }
   0xd   : > { %s2709_s8 = scalar_lea.vmem %s200_s29, 512  ;;  %p2717_p12 = scmp.lt.s32.totalorder %s200_s29, %s200_s29 }
   0xe   : > { %p2954_p7 = pnand %p2404_p6, %p2934_p1  ;;  %p2710_p9 = scmp.ne.s32.totalorder %s200_s29, %s2709_s8 }
   0xf   : > { %p2718_p13 = scmp.lt.s32.totalorder %s2709_s8, %s2709_s8 }
  0x10   : > { %p2700_p8 = pneg %p2954_p7 }
  0x11   : > { %p2719_p0 = por %p2718_p13, %p2717_p12 }
  0x12   : > { %p2712_p10 = pnand %p2710_p9, %p2700_p8 }
  0x14   : > { %p2713_p11 = pneg %p2712_p10 }
  0x16   : > { %p2720_p2 = pnand %p2719_p0, %p2713_p11 }
  0x18   : > { %2723 = shalt.err (!%p2720_p2)
}
  0x19   : > { %s2864_s9 = smov 256   ;;  %s2865_s10 = smov 16  }
  0x1a   : > { %2407 = dma.hbm_to_vmem [thread:$0]  (!%p2954_p7), %s3743_s2, 512, %s200_s29, [#allocation8], %s2864_s9, %s2864_s9, %s2865_s10  }
  0x1b   : > { %s2735_s13 = scalar_lea.vmem %s213_s7, 4096  ;;  %p2743_p10 = scmp.lt.s32.totalorder %s213_s7, %s213_s7 }
  0x1c   : > { %p2736_p3 = scmp.ne.s32.totalorder %s213_s7, %s2735_s13  ;;  %p2744_p1 = scmp.lt.s32.totalorder %s2735_s13, %s2735_s13 }
  0x1e   : > { %p2738_p6 = pnand %p2736_p3, %p2700_p8  ;;  %p2745_p12 = por %p2744_p1, %p2743_p10 }
  0x20   : > { %p2739_p9 = pneg %p2738_p6 }
  0x22   : > { %p2746_p11 = pnand %p2745_p12, %p2739_p9 }
  0x24   : > { %2749 = shalt.err (!%p2746_p11)
}
  0x25   : > { %2410 = dma.hbm_to_vmem [thread:$0]  (!%p2954_p7), %s3744_s3, 4096, %s213_s7, [#allocation8], %s2864_s9, %s2864_s9, %s2865_s10  }
  0x26   : > { %s29_s16 = sadd.s32 1, %s2856_s22  ;;  %s41_s17 = sadd.s32 1, %s2848_s20 }
  0x27   : > { %p30_p1 = scmp.ge.s32.totalorder %s29_s16, 2  ;;  %p48_p8 = scmp.ne.s32.totalorder %s2848_s20, %s2844_s19 }
  0x28   : > { %p49_p13 = scmp.eq.s32.totalorder %s2860_s23, 0  ;;  %p2417_p0 = scmp.lt.s32.totalorder %s2860_s23, 2 }
  0x29   : > { %s3809_s16 = smov (%p30_p1, %s29_s16), 0  ;;  %s229_s18 = sand.u32 1, %s2848_s20  }
  0x2a   : > { %p50_p2 = por %p49_p13, %p48_p8  ;;  %s36_s28 = ssub.s32 %s2856_s22, %s3809_s16 }
  0x2b   : > { %p39_p3 = scmp.eq.s32.totalorder %s36_s28, 0  ;;  %s2292_s29 = sshll.u32 %s229_s18, 5 }
  0x2c   : > { %s2389_s30 = sshll.u32 %s2856_s22, 9  ;;  %s233_s10 = scalar_lea.vmem [#allocation4], %s2292_s29 }
  0x2d   : > { %s2989_s6 = scalar_select %p39_p3, %s2848_s20, %s41_s17  }
  0x2e   : > { %s240_s9 = scalar_lea.hbm %s3741_s0, %s2389_s30  ;;  %s241_s11 = sshll.u32 %s233_s10, 4  ;;  %s242_s11 = int_to_ptr.vmem [resolvable:$true] %s241_s11 }
  0x2f   : > { %p2996_p7 = pnand %p2417_p0, %p50_p2  ;;  %s230_s13 = scalar_lea.sflag [#allocation5], %s229_s18 }
  0x30   : > { %s2763_s14 = scalar_lea.vmem %s242_s11, 512  ;;  %s2866_s15 = smov [#allocation4]  }
  0x31   : > { %p2752_p6 = pneg %p2996_p7  ;;  %p2764_p9 = scmp.ne.s32.totalorder %s242_s11, %s2763_s14 }
  0x32   : > { %s2768_s17 = sshll.u32 %s2866_s15, 4  ;;  %s2769_s17 = int_to_ptr.vmem [resolvable:$false] %s2768_s17 }
  0x33   : > { %p2766_p10 = pnand %p2764_p9, %p2752_p6  ;;  %s2770_s28 = scalar_lea.vmem %s2769_s17, 1024 }
  0x34   : > { %p2771_p11 = scmp.lt.s32.totalorder %s242_s11, %s2769_s17  ;;  %p2772_p1 = scmp.lt.s32.totalorder %s2770_s28, %s2763_s14 }
  0x35   : > { %p2767_p12 = pneg %p2766_p10 }
  0x36   : > { %p2773_p8 = por %p2772_p1, %p2771_p11 }
  0x38   : > { %p2774_p13 = pnand %p2773_p8, %p2767_p12 }
  0x3a   : > { %2777 = shalt.err (!%p2774_p13)
}
  0x3b   : > { %s2867_s29 = smov 64   ;;  %s2868_s30 = smov 4  }
  0x3c   : > { %2414 = dma.hbm_to_vmem [thread:$0]  (!%p2996_p7), %s240_s9, 512, %s242_s11, %s230_s13, %s2867_s29, %s2867_s29, %s2868_s30  }
  0x3d   : > { %253 = sbr.rel (%p2946_p5) target bundleno = 2227 (0x8b3), region = 40 }
  0x42   : > { %s255_s18 = sand.u32 1, %s2844_s19  }
  0x43   : > { %s2296_s8 = sshll.u32 %s255_s18, 5  ;;  %s256_s7 = scalar_lea.sflag [#allocation5], %s255_s18 }
  0x44   : > { %s3007_s10 = scalar_lea.vmem [#allocation4], %s2296_s8 }
  0x45   : > { %2827 = dma.done.wait (%p2942_p4), %s256_s7, 512  }
  0x46   : > { %2829 = vsyncadd (%p2942_p4), %s256_s7, 4294966784  ;;  %p3776_p0 = scmp.ne.s32.totalorder %s3771_s25, 0 }
  0x48   : > { %2831 = dma.done.wait (%p3776_p0), [#allocation8], 4608  }
  0x49   : > { %2833 = vsyncadd (%p3776_p0), [#allocation8], 4294962688  ;;  %p2299_p5 = scmp.ne.s32.totalorder %s2852_s21, 0 }
  0x4b   : > { %302 = sbr.rel (%p2299_p5) target bundleno = 82 (0x52), region = 56 }
  0x50   : > { %v2869_v0 = vmov 0.0  }
  0x51   : > { %303 = vst [vmem:[#allocation2] sm:$0xff] %v2869_v0  ;;  %304 = vst [vmem:[#allocation3] sm:$0xff] %v2869_v0 }
  0x52 PF: > { %v3018_v1 = vld [vmem:[#allocation9 + $0xe4] ss:$16 sps:$4 sm:$0xff]   ;;  %v3020_v2 = vld [vmem:[#allocation9 + $0xe0] ss:$16 sps:$4 sm:$0xff]   ;;  %v3749_v3 = vmov 0   ;;  %vm634_vm0 = vcmask 130048   ;;  %v307_v50 = vlaneseq }
  0x53   : > { %564 = vmatprep.mubr.bf16.mxu0 %v3749_v3  ;;  %605 = vmatprep.mubr.bf16.mxu1 %v3749_v3  ;;  %v3025_v4 = vld [vmem:[#allocation9 + $0xc4] ss:$16 sps:$4 sm:$0xff]   ;;  %v3029_v5 = vld [vmem:[#allocation9 + $0xc0] ss:$16 sps:$4 sm:$0xff]   ;;  %v3034_v7 = vld [vmem:[#allocation9 + $0xec] ss:$16 sps:$4 sm:$0xff]  }
  0x54   : > { %532 = vmatprep.subr.bf16.mxu0 %v3018_v1  ;;  %2479 = vset.pattern.permute.xlu0 %v3749_v3  ;;  %v3031_v6 = vld [vmem:[#allocation9 + $0xa4] ss:$16 sps:$4 sm:$0xff]   ;;  %v3036_v8 = vld [vmem:[#allocation9 + $0xe8] ss:$16 sps:$4 sm:$0xff]   ;;  %v3038_v9 = vld [vmem:[#allocation9 + $0xa0] ss:$16 sps:$4 sm:$0xff]  }
  0x55   : > { %533 = vmatpush1.bf16.msra.mxu0 %v3020_v2  ;;  %573 = vmatprep.subr.bf16.mxu1 %v3034_v7  ;;  %v3043_v10 = vld [vmem:[#allocation9 + $0xcc] ss:$16 sps:$4 sm:$0xff]   ;;  %v3045_v11 = vld [vmem:[#allocation9 + $0xc8] ss:$16 sps:$4 sm:$0xff]   ;;  %v3048_v12 = vld [vmem:[#allocation9 + $0x84] ss:$16 sps:$4 sm:$0xff]  }
  0x56   : > { %534 = vmatprep.subr.bf16.mxu0 %v3025_v4  ;;  %574 = vmatpush1.bf16.msra.mxu1 %v3036_v8  ;;  %v3051_v13 = vld [vmem:[#allocation9 + $0x80] ss:$16 sps:$4 sm:$0xff]   ;;  %v3053_v14 = vld [vmem:[#allocation9 + $0xac] ss:$16 sps:$4 sm:$0xff]   ;;  %v3057_v15 = vld [vmem:[#allocation9 + $0x64] ss:$16 sps:$4 sm:$0xff]  }
  0x57   : > { %575 = vmatprep.subr.bf16.mxu1 %v3043_v10  ;;  %v3059_v16 = vld [vmem:[#allocation9 + $0xa8] ss:$16 sps:$4 sm:$0xff]   ;;  %v3063_v17 = vld [vmem:[#allocation9 + $0x8c] ss:$16 sps:$4 sm:$0xff]   ;;  %v3065_v18 = vld [vmem:[#allocation9 + $0x60] ss:$16 sps:$4 sm:$0xff]  }
  0x58   : > { %v3069_v19 = vld [vmem:[#allocation9 + $0x44] ss:$16 sps:$4 sm:$0xff]   ;;  %v3071_v20 = vld [vmem:[#allocation9 + $0x88] ss:$16 sps:$4 sm:$0xff]   ;;  %v3075_v21 = vld [vmem:[#allocation9 + $0x6c] ss:$16 sps:$4 sm:$0xff]  }
  0x59   : > { %535 = vmatpush1.bf16.msra.mxu0 %v3029_v5  ;;  %v3077_v22 = vld [vmem:[#allocation9 + $0x40] ss:$16 sps:$4 sm:$0xff]   ;;  %v3079_v23 = vld [vmem:[#allocation9 + $0x24] ss:$16 sps:$4 sm:$0xff]   ;;  %v3083_v24 = vld [vmem:[#allocation9 + $0x68] ss:$16 sps:$4 sm:$0xff]  }
  0x5a   : > { %536 = vmatprep.subr.bf16.mxu0 %v3031_v6  ;;  %576 = vmatpush1.bf16.msra.mxu1 %v3045_v11  ;;  %v3087_v25 = vld [vmem:[#allocation9 + $0x4c] ss:$16 sps:$4 sm:$0xff]   ;;  %v3089_v26 = vld [vmem:[#allocation9 + $0x20] ss:$16 sps:$4 sm:$0xff]   ;;  %v3093_v27 = vld [vmem:[#allocation9 + $0x48] ss:$16 sps:$4 sm:$0xff]  }
  0x5b   : > { %577 = vmatprep.subr.bf16.mxu1 %v3053_v14  ;;  %v3096_v28 = vld [vmem:[#allocation9 + $0x4] ss:$16 sps:$4 sm:$0xff]   ;;  %v3099_v29 = vld [vmem:[#allocation9 + $0x2c] ss:$16 sps:$4 sm:$0xff]   ;;  %v3105_v31 = vld [vmem:[#allocation9] ss:$16 sps:$4 sm:$0xff]  }
  0x5c   : > { %v327_v30 = vld [vmem:[%s3742_s1] sm:$0xff]  ;;  %v3110_v33 = vld [vmem:[#allocation9 + $0x28] ss:$16 sps:$4 sm:$0xff]   ;;  %v3116_v35 = vld [vmem:[#allocation9 + $0xc] ss:$16 sps:$4 sm:$0xff]   ;;  %s3178_s27 = sshll.u32 %s2852_s21, 3 }
  0x5d   : > { %537 = vmatpush1.bf16.msra.mxu0 %v3038_v9  ;;  %329 = vperm.xlu0 %2479, %v327_v30   ;;  %v3108_v32 = vld [vmem:[#allocation2] sm:$0xff]  ;;  %v3124_v38 = vld [vmem:[#allocation9 + $0x8] ss:$16 sps:$4 sm:$0xff]   ;;  %v3128_v39 = vld [vmem:[#allocation7 + $0xc] ss:$16 sps:$4 sm:$0xff]   ;;  %s2168_s9 = sadd.s32 7, %s3178_s27 }
  0x5e   : > { %538 = vmatprep.subr.bf16.mxu0 %v3048_v12  ;;  %578 = vmatpush1.bf16.msra.mxu1 %v3059_v16  ;;  %v3113_v34 = vld [vmem:[#allocation7 + $0x4] ss:$16 sps:$4 sm:$0xff]   ;;  %v339_v36 = vpack.c.bf16 %v3108_v32, %v3108_v32  ;;  %v3121_v37 = vld [vmem:[#allocation7] ss:$16 sps:$4 sm:$0xff]   ;;  %3778 = vst [vmem:[#allocation15_spill] sm:$0xff] %v3124_v38  ;;  %3779 = vst [vmem:[#allocation16_spill] sm:$0xff] %v3128_v39  ;;  %v3181_v42 = vstv %s2168_s9 }
  0x5f   : > { %579 = vmatprep.subr.bf16.mxu1 %v3063_v17  ;;  %3777 = vst [vmem:[#allocation14_spill] sm:$0xff] %v3113_v34  ;;  %v3132_v40 = vld [vmem:[#allocation7 + $0x8] ss:$16 sps:$4 sm:$0xff]   ;;  %v334_v41 = vld [vmem:[%s3007_s10] sm:$0xf]  ;;  %3780 = vst [vmem:[#allocation17_spill] sm:$0xff] %v3181_v42 }
  0x60   : > { %s950_s11 = sadd.s32 1, %s3178_s27  ;;  %s1153_s12 = sadd.s32 2, %s3178_s27  ;;  %v308_v51 = vshrl.u32 %v307_v50, 7  ;;  %v305_v56 = vld [vmem:[%s3745_s4] sm:$0xf] }
  0x61   : > { %539 = vmatpush1.bf16.msra.mxu0 %v3051_v13  ;;  %v3189_v44 = vstv %s950_s11  ;;  %v3191_v45 = vstv %s1153_s12  ;;  %s1356_s13 = sadd.s32 3, %s3178_s27  ;;  %s1559_s14 = sadd.s32 4, %s3178_s27 }
  0x62   : > { %540 = vmatprep.subr.bf16.mxu0 %v3057_v15  ;;  %580 = vmatpush1.bf16.msra.mxu1 %v3071_v20  ;;  %3781 = vst [vmem:[#allocation18_spill] sm:$0xff] %v3191_v45  ;;  %v3199_v46 = vstv %s1356_s13  ;;  %v3201_v47 = vstv %s1559_s14  ;;  %s1762_s15 = sadd.s32 5, %s3178_s27  ;;  %s1965_s17 = sadd.s32 6, %s3178_s27  ;;  %v309_v54 = vsub.s32 0, %v308_v51  ;;  %v313_v58 = vsub.s32 1, %v308_v51 }
  0x63   : > { %581 = vmatprep.subr.bf16.mxu1 %v3075_v21  ;;  %3782 = vst [vmem:[#allocation19_spill] sm:$0xff] %v3199_v46  ;;  %3783 = vst [vmem:[#allocation20_spill] sm:$0xff] %v3201_v47  ;;  %v3209_v48 = vstv %s1762_s15  ;;  %v3211_v49 = vstv %s1965_s17  ;;  %p2384_p4 = scmp.ne.s32.totalorder %s2852_s21, 1 }
  0x64   : > { %3784 = vst [vmem:[#allocation21_spill] sm:$0xff] %v3209_v48  ;;  %3785 = vst [vmem:[#allocation22_spill] sm:$0xff] %v3211_v49  ;;  %v3220_v61 = vrot.slane %v305_v56, %v309_v54  ;;  %v3222_v30 = vrot.slane %v305_v56, %v313_v58 }
  0x65   : > { %541 = vmatpush1.bf16.msra.mxu0 %v3065_v18 }
  0x66   : > { %542 = vmatprep.subr.bf16.mxu0 %v3069_v19  ;;  %582 = vmatpush1.bf16.msra.mxu1 %v3083_v24 }
  0x67   : > { %583 = vmatprep.subr.bf16.mxu1 %v3087_v25 }
  0x69   : > { %543 = vmatpush1.bf16.msra.mxu0 %v3077_v22 }
  0x6a   : > { %544 = vmatprep.subr.bf16.mxu0 %v3079_v23  ;;  %584 = vmatpush1.bf16.msra.mxu1 %v3093_v27 }
  0x6b   : > { %585 = vmatprep.subr.bf16.mxu1 %v3099_v29 }
  0x6d   : > { %545 = vmatpush1.bf16.msra.mxu0 %v3089_v26 }
  0x6e   : > { %546 = vmatprep.subr.bf16.mxu0 %v3096_v28  ;;  %586 = vmatpush1.bf16.msra.mxu1 %v3110_v33 }
  0x6f   : > { %587 = vmatprep.subr.bf16.mxu1 %v3116_v35 }
  0x71   : > { %547 = vmatpush1.bf16.msra.mxu0 %v3105_v31 }
  0x72   : > { %652 = vmatprep.subr.bf16.mxu0 %v3113_v34  ;;  %588 = vmatpush1.bf16.msra.mxu1 %v3124_v38 }
  0x73   : > { %693 = vmatprep.subr.bf16.mxu1 %v3128_v39 }
  0x74   : > { %565 = vmatmul.mubr.bf16.vlgmr.msra.gmra.mxu0 %v339_v36 }
  0x75   : > { %653 = vmatpush1.bf16.msra.mxu0 %v3121_v37  ;;  %670 = vmatprep.mubr.bf16.mxu0 %v3749_v3 }
  0x76   : > { %755 = vmatprep.subr.bf16.mxu0 %v3018_v1  ;;  %606 = vmatmul.mubr.bf16.vlgmr.msra.gmra.mxu1 %v339_v36 }
  0x77   : > { %694 = vmatpush1.bf16.msra.mxu1 %v3132_v40  ;;  %711 = vmatprep.mubr.bf16.mxu1 %v3749_v3 }
  0x78   : > { %796 = vmatprep.subr.bf16.mxu1 %v3034_v7 }
  0x7c   : > { %2337 = vmatmul.mubr.msk.bf16.vlgmr.msra.gmra.mxu0 %vm634_vm0, %v334_v41 }
  0x7d   : > { %756 = vmatpush1.bf16.msra.mxu0 %v3020_v2  ;;  %787 = vmatprep.mubr.bf16.mxu0 %v3749_v3 }
  0x7e   : > { %757 = vmatprep.subr.bf16.mxu0 %v3025_v4  ;;  %2338 = vmatmul.mubr.msk.bf16.vlgmr.msra.gmra.mxu1 %vm634_vm0, %v334_v41 }
  0x7f   : > { %797 = vmatpush1.bf16.msra.mxu1 %v3036_v8  ;;  %828 = vmatprep.mubr.bf16.mxu1 %v3749_v3 }
  0x80   : > { %798 = vmatprep.subr.bf16.mxu1 %v3043_v10 }
  0x81   : > { %758 = vmatpush1.bf16.msra.mxu0 %v3029_v5 }
  0x82   : > { %759 = vmatprep.subr.bf16.mxu0 %v3031_v6 }
  0x83   : > { %799 = vmatpush1.bf16.msra.mxu1 %v3045_v11 }
  0x84   : > { %800 = vmatprep.subr.bf16.mxu1 %v3053_v14 }
  0x85   : > { %760 = vmatpush1.bf16.msra.mxu0 %v3038_v9 }
  0x86   : > { %761 = vmatprep.subr.bf16.mxu0 %v3048_v12 }
  0x87   : > { %801 = vmatpush1.bf16.msra.mxu1 %v3059_v16 }
  0x88   : > { %802 = vmatprep.subr.bf16.mxu1 %v3063_v17 }
  0x89   : > { %762 = vmatpush1.bf16.msra.mxu0 %v3051_v13 }
  0x8a   : > { %763 = vmatprep.subr.bf16.mxu0 %v3057_v15 }
  0x8b   : > { %803 = vmatpush1.bf16.msra.mxu1 %v3071_v20 }
  0x8c   : > { %804 = vmatprep.subr.bf16.mxu1 %v3075_v21 }
  0x8d   : > { %764 = vmatpush1.bf16.msra.mxu0 %v3065_v18 }
  0x8e   : > { %765 = vmatprep.subr.bf16.mxu0 %v3069_v19 }
  0x8f   : > { %805 = vmatpush1.bf16.msra.mxu1 %v3083_v24 }
  0x90   : > { %806 = vmatprep.subr.bf16.mxu1 %v3087_v25 }
  0x91   : > { %766 = vmatpush1.bf16.msra.mxu0 %v3077_v22 }
  0x92   : > { %767 = vmatprep.subr.bf16.mxu0 %v3079_v23 }
  0x93   : > { %807 = vmatpush1.bf16.msra.mxu1 %v3093_v27 }
  0x94   : > { %808 = vmatprep.subr.bf16.mxu1 %v3099_v29 }
  0x95   : > { %768 = vmatpush1.bf16.msra.mxu0 %v3089_v26 }
  0x96   : > { %769 = vmatprep.subr.bf16.mxu0 %v3096_v28 }
  0x97   : > { %809 = vmatpush1.bf16.msra.mxu1 %v3110_v33 }
  0x98   : > { %810 = vmatprep.subr.bf16.mxu1 %v3116_v35 }
  0x99   : > { %770 = vmatpush1.bf16.msra.mxu0 %v3105_v31 }
  0x9a   : > { %854 = vmatprep.subr.bf16.mxu0 %v3113_v34 }
  0x9b   : > { %811 = vmatpush1.bf16.msra.mxu1 %v3124_v38 }
  0x9c   : > { %895 = vmatprep.subr.bf16.mxu1 %v3128_v39 }
  0xd8   : > { %v3183_v43 = vpop.permute.xlu0 %329 }
  0xd9   : > { %vm2170_vm1 = vcmp.lt.s32.totalorder %v3181_v42, %v3183_v43  ;;  %vm952_vm2 = vcmp.lt.s32.totalorder %v3189_v44, %v3183_v43  ;;  %vm1155_vm3 = vcmp.lt.s32.totalorder %v3191_v45, %v3183_v43  ;;  %vm1358_vm4 = vcmp.lt.s32.totalorder %v3199_v46, %v3183_v43  ;;  %v2348_v44 = vld [vmem:[%s3007_s10 + $0x8] sm:$0xf] }
  0xda   : > { %vm1561_vm5 = vcmp.lt.s32.totalorder %v3201_v47, %v3183_v43  ;;  %vm1764_vm6 = vcmp.lt.s32.totalorder %v3209_v48, %v3183_v43  ;;  %vm1967_vm7 = vcmp.lt.s32.totalorder %v3211_v49, %v3183_v43 }
 0x134   : > { %v566_v52 = vpop.f32.mrf.mxu0 }
 0x136   : > { %v568_v53 = vpop.f32.mrf.mxu0  ;;  %v607_v57 = vpop.f32.mrf.mxu1 }
 0x138   : > { %v570_v55 = vpop.f32.mrf.mxu0  ;;  %v609_v60 = vpop.f32.mrf.mxu1 }
 0x13a   : > { %v571_v59 = vpop.f32.mrf.mxu0  ;;  %v611_v63 = vpop.f32.mrf.mxu1 }
 0x13b   : > { %v321_v59 = vsub.s32 3, %v308_v51  ;;  %v317_v63 = vsub.s32 2, %v308_v51  ;;  %v333_v51 = vld [vmem:[#allocation3] sm:$0xff] }
 0x13c   : > { %v672_v62 = vpop.f32.mrf.mxu0  ;;  %v612_v41 = vpop.f32.mrf.mxu1 }
 0x13d   : > { %v673_v0 = vadd.f32 %v672_v62, %v566_v52  ;;  %v3226_v52 = vrot.slane %v305_v56, %v321_v59 }
 0x13e   : > { %v674_v36 = vpop.f32.mrf.mxu0  ;;  %v713_v42 = vpop.f32.mrf.mxu1 }
 0x13f   : > { %v720_v50 = vadd.f32 %v673_v0, %v3220_v61  ;;  %v675_v55 = vadd.f32 %v674_v36, %v568_v53  ;;  %v3229_v53 = vrot.slane %v305_v56, %v317_v63 }
 0x140   : > { %v676_v3 = vpop.f32.mrf.mxu0  ;;  %v715_v46 = vpop.f32.mrf.mxu1 }
 0x141   : > { %v2339_v49 = vmul.f32 -1.442695, %v720_v50  ;;  %v721_v48 = vadd.f32 %v675_v55, %v3222_v30  ;;  %v716_v58 = vadd.f32 %v715_v46, %v609_v60  ;;  %v714_v3 = vadd.f32 %v713_v42, %v607_v57 }
 0x142   : > { %v677_v47 = vpop.f32.mrf.mxu0  ;;  %v717_v45 = vpop.f32.mrf.mxu1  ;;  %v748_v55 = vstv %s3178_s27 }
 0x143   : > { %2534 = vpow2.f32 %v2339_v49  ;;  %v2340_v54 = vmul.f32 -1.442695, %v721_v48  ;;  %v723_v0 = vadd.f32 %v716_v58, %v3226_v52  ;;  %v722_v47 = vadd.f32 %v714_v3, %v3229_v53 }
 0x144   : > { %v718_v62 = vpop.f32.mrf.mxu1  ;;  %vm749_vm8 = vcmp.lt.s32.totalorder %v748_v55, %v3183_v43 }
 0x145   : > { %2536 = vpow2.f32 %v2340_v54  ;;  %v2341_v36 = vmul.f32 -1.442695, %v723_v0 }
 0x147   : > { %2538 = vpow2.f32 %v2341_v36 }
 0x150   : > { %v2535_v41 = vpop.eup %2534 }
 0x151   : > { %v727_v50 = vadd.f32 1.0, %v2535_v41  ;;  %v3786_v41 = vmov 0  }
 0x152   : > { %v2537_v49 = vpop.eup %2536 }
 0x153   : > { %2540 = vrcp.f32 %v727_v50  ;;  %v733_v45 = vadd.f32 1.0, %v2537_v49 }
 0x154   : > { %2542 = vtanh.f32 %v722_v47  ;;  %v2539_v46 = vpop.eup %2538  ;;  %v2342_v47 = vld [vmem:[%s3007_s10 + $0x4] sm:$0xf] }
 0x155   : > { %2544 = vrcp.f32 %v733_v45  ;;  %v740_v59 = vadd.f32 1.0, %v2539_v46 }
 0x157   : > { %2546 = vrcp.f32 %v740_v59 }
 0x160   : > { %v2541_v48 = vpop.eup %2540 }
 0x161   : > { %v2543_v60 = vpop.eup %2542 }
 0x162   : > { %v2545_v56 = vpop.eup %2544  ;;  %v744_v54 = vmul.f32 %v2543_v60, %v2541_v48 }
 0x163   : > { %v743_v42 = vmul.f32 %v2545_v56, %v333_v51 }
 0x164   : > { %v2547_v62 = vpop.eup %2546 }
 0x165   : > { %v745_v57 = vadd.f32 %v744_v54, %v743_v42 }
 0x167   : > { %2548 = vtanh.f32 %v745_v57  ;;  %v3234_v58 = vsel %vm749_vm8, %v745_v57, %v333_v51 }
 0x174   : > { %v2549_v63 = vpop.eup %2548 }
 0x175   : > { %v747_v0 = vmul.f32 %v2549_v63, %v2547_v62 }
 0x177   : > { %v3237_v3 = vsel %vm749_vm8, %v747_v0, %v3108_v32 }
 0x178   : > { %v754_v36 = vpack.c.bf16 %v3237_v3, %v3237_v3 }
 0x17a   : > { %788 = vmatmul.mubr.bf16.vlgmr.msra.gmra.mxu0 %v754_v36  ;;  %829 = vmatmul.mubr.bf16.vlgmr.msra.gmra.mxu1 %v754_v36 }
 0x17b   : > { %855 = vmatpush1.bf16.msra.mxu0 %v3121_v37  ;;  %896 = vmatpush1.bf16.msra.mxu1 %v3132_v40 }
 0x17c   : > { %872 = vmatprep.mubr.bf16.mxu0 %v3786_v41  ;;  %913 = vmatprep.mubr.bf16.mxu1 %v3786_v41 }
 0x17d   : > { %958 = vmatprep.subr.bf16.mxu0 %v3018_v1  ;;  %999 = vmatprep.subr.bf16.mxu1 %v3034_v7 }
 0x182   : > { %2343 = vmatmul.mubr.msk.bf16.vlgmr.msra.gmra.mxu0 %vm634_vm0, %v2342_v47  ;;  %2344 = vmatmul.mubr.msk.bf16.vlgmr.msra.gmra.mxu1 %vm634_vm0, %v2342_v47 }
 0x183   : > { %959 = vmatpush1.bf16.msra.mxu0 %v3020_v2  ;;  %1000 = vmatpush1.bf16.msra.mxu1 %v3036_v8 }
 0x184   : > { %960 = vmatprep.subr.bf16.mxu0 %v3025_v4  ;;  %1001 = vmatprep.subr.bf16.mxu1 %v3043_v10 }
 0x185   : > { %990 = vmatprep.mubr.bf16.mxu0 %v3786_v41  ;;  %1031 = vmatprep.mubr.bf16.mxu1 %v3786_v41 }
 0x187   : > { %961 = vmatpush1.bf16.msra.mxu0 %v3029_v5  ;;  %1002 = vmatpush1.bf16.msra.mxu1 %v3045_v11 }
 0x188   : > { %962 = vmatprep.subr.bf16.mxu0 %v3031_v6  ;;  %1003 = vmatprep.subr.bf16.mxu1 %v3053_v14 }
 0x18b   : > { %963 = vmatpush1.bf16.msra.mxu0 %v3038_v9  ;;  %1004 = vmatpush1.bf16.msra.mxu1 %v3059_v16 }
 0x18c   : > { %964 = vmatprep.subr.bf16.mxu0 %v3048_v12  ;;  %1005 = vmatprep.subr.bf16.mxu1 %v3063_v17 }
 0x18f   : > { %965 = vmatpush1.bf16.msra.mxu0 %v3051_v13  ;;  %1006 = vmatpush1.bf16.msra.mxu1 %v3071_v20 }
 0x190   : > { %966 = vmatprep.subr.bf16.mxu0 %v3057_v15  ;;  %1007 = vmatprep.subr.bf16.mxu1 %v3075_v21 }
 0x193   : > { %967 = vmatpush1.bf16.msra.mxu0 %v3065_v18  ;;  %1008 = vmatpush1.bf16.msra.mxu1 %v3083_v24 }
 0x194   : > { %968 = vmatprep.subr.bf16.mxu0 %v3069_v19  ;;  %1009 = vmatprep.subr.bf16.mxu1 %v3087_v25 }
 0x197   : > { %969 = vmatpush1.bf16.msra.mxu0 %v3077_v22  ;;  %1010 = vmatpush1.bf16.msra.mxu1 %v3093_v27 }
 0x198   : > { %970 = vmatprep.subr.bf16.mxu0 %v3079_v23  ;;  %1011 = vmatprep.subr.bf16.mxu1 %v3099_v29 }
 0x19b   : > { %971 = vmatpush1.bf16.msra.mxu0 %v3089_v26  ;;  %1012 = vmatpush1.bf16.msra.mxu1 %v3110_v33 }
 0x19c   : > { %972 = vmatprep.subr.bf16.mxu0 %v3096_v28  ;;  %1013 = vmatprep.subr.bf16.mxu1 %v3116_v35 }
 0x19f   : > { %973 = vmatpush1.bf16.msra.mxu0 %v3105_v31  ;;  %1014 = vmatpush1.bf16.msra.mxu1 %v3124_v38 }
 0x1a0   : > { %1057 = vmatprep.subr.bf16.mxu0 %v3113_v34  ;;  %1098 = vmatprep.subr.bf16.mxu1 %v3128_v39 }
 0x23a   : > { %v789_v32 = vpop.f32.mrf.mxu0  ;;  %v830_v50 = vpop.f32.mrf.mxu1 }
 0x23c   : > { %v791_v49 = vpop.f32.mrf.mxu0  ;;  %v832_v45 = vpop.f32.mrf.mxu1 }
 0x23e   : > { %v793_v46 = vpop.f32.mrf.mxu0  ;;  %v834_v48 = vpop.f32.mrf.mxu1 }
 0x240   : > { %v794_v51 = vpop.f32.mrf.mxu0  ;;  %v835_v60 = vpop.f32.mrf.mxu1 }
 0x242   : > { %v874_v55 = vpop.f32.mrf.mxu0  ;;  %v915_v56 = vpop.f32.mrf.mxu1 }
 0x243   : > { %v875_v59 = vadd.f32 %v874_v55, %v789_v32  ;;  %v916_v60 = vadd.f32 %v915_v56, %v830_v50 }
 0x244   : > { %v876_v54 = vpop.f32.mrf.mxu0  ;;  %v917_v42 = vpop.f32.mrf.mxu1 }
 0x245   : > { %v922_v57 = vadd.f32 %v875_v59, %v3220_v61  ;;  %v877_v62 = vadd.f32 %v876_v54, %v791_v49  ;;  %v918_v48 = vadd.f32 %v917_v42, %v832_v45  ;;  %v924_v38 = vadd.f32 %v916_v60, %v3229_v53 }
 0x246   : > { %v878_v63 = vpop.f32.mrf.mxu0  ;;  %v919_v0 = vpop.f32.mrf.mxu1 }
 0x247   : > { %v2345_v36 = vmul.f32 -1.442695, %v922_v57  ;;  %v923_v47 = vadd.f32 %v877_v62, %v3222_v30  ;;  %v925_v51 = vadd.f32 %v918_v48, %v3226_v52  ;;  %v3789_v48 = vld [vmem:[#allocation16_spill] sm:$0xff] }
 0x248   : > { %v879_v39 = vpop.f32.mrf.mxu0  ;;  %v920_v34 = vpop.f32.mrf.mxu1 }
 0x249   : > { %2550 = vpow2.f32 %v2345_v36  ;;  %v2346_v46 = vmul.f32 -1.442695, %v923_v47  ;;  %v2347_v32 = vmul.f32 -1.442695, %v925_v51 }
 0x24b   : > { %2552 = vpow2.f32 %v2346_v46 }
 0x24c   : > { %2554 = vpow2.f32 %v2347_v32 }
 0x256   : > { %v2551_v55 = vpop.eup %2550 }
 0x257   : > { %v929_v59 = vadd.f32 1.0, %v2551_v55 }
 0x258   : > { %v2553_v49 = vpop.eup %2552 }
 0x259   : > { %2556 = vrcp.f32 %v929_v59  ;;  %v935_v54 = vadd.f32 1.0, %v2553_v49  ;;  %v2555_v39 = vpop.eup %2554 }
 0x25a   : > { %2558 = vtanh.f32 %v924_v38  ;;  %v942_v63 = vadd.f32 1.0, %v2555_v39 }
 0x25b   : > { %2560 = vrcp.f32 %v935_v54 }
 0x25c   : > { %2562 = vrcp.f32 %v942_v63 }
 0x266   : > { %v2557_v34 = vpop.eup %2556 }
 0x267   : > { %v2559_v57 = vpop.eup %2558 }
 0x268   : > { %v2561_v62 = vpop.eup %2560  ;;  %v946_v45 = vmul.f32 %v2559_v57, %v2557_v34 }
 0x269   : > { %v945_v42 = vmul.f32 %v2561_v62, %v3234_v58  ;;  %v2563_v38 = vpop.eup %2562 }
 0x26b   : > { %v947_v50 = vadd.f32 %v946_v45, %v945_v42 }
 0x26d   : > { %2564 = vtanh.f32 %v947_v50  ;;  %v3293_v56 = vsel %vm952_vm2, %v947_v50, %v3234_v58  ;;  %v3787_v58 = vld [vmem:[#allocation15_spill] sm:$0xff] }
 0x27a   : > { %v2565_v0 = vpop.eup %2564 }
 0x27b   : > { %v949_v36 = vmul.f32 %v2565_v0, %v2563_v38 }
 0x27d   : > { %v3299_v47 = vsel %vm952_vm2, %v949_v36, %v3237_v3  ;;  %v3788_v3 = vld [vmem:[#allocation14_spill] sm:$0xff] }
 0x27e   : > { %v957_v46 = vpack.c.bf16 %v3299_v47, %v3299_v47 }
 0x280   : > { %991 = vmatmul.mubr.bf16.vlgmr.msra.gmra.mxu0 %v957_v46  ;;  %1032 = vmatmul.mubr.bf16.vlgmr.msra.gmra.mxu1 %v957_v46 }
 0x281   : > { %1058 = vmatpush1.bf16.msra.mxu0 %v3121_v37  ;;  %1099 = vmatpush1.bf16.msra.mxu1 %v3132_v40 }
 0x282   : > { %1075 = vmatprep.mubr.bf16.mxu0 %v3786_v41  ;;  %1116 = vmatprep.mubr.bf16.mxu1 %v3786_v41 }
 0x283   : > { %1161 = vmatprep.subr.bf16.mxu0 %v3018_v1  ;;  %1202 = vmatprep.subr.bf16.mxu1 %v3034_v7 }
 0x288   : > { %2349 = vmatmul.mubr.msk.bf16.vlgmr.msra.gmra.mxu0 %vm634_vm0, %v2348_v44  ;;  %2350 = vmatmul.mubr.msk.bf16.vlgmr.msra.gmra.mxu1 %vm634_vm0, %v2348_v44 }
 0x289   : > { %1162 = vmatpush1.bf16.msra.mxu0 %v3020_v2  ;;  %1203 = vmatpush1.bf16.msra.mxu1 %v3036_v8 }
 0x28a   : > { %1163 = vmatprep.subr.bf16.mxu0 %v3025_v4  ;;  %1204 = vmatprep.subr.bf16.mxu1 %v3043_v10 }
 0x28b   : > { %1193 = vmatprep.mubr.bf16.mxu0 %v3786_v41  ;;  %1234 = vmatprep.mubr.bf16.mxu1 %v3786_v41 }
 0x28d   : > { %1164 = vmatpush1.bf16.msra.mxu0 %v3029_v5  ;;  %1205 = vmatpush1.bf16.msra.mxu1 %v3045_v11 }
 0x28e   : > { %1165 = vmatprep.subr.bf16.mxu0 %v3031_v6  ;;  %1206 = vmatprep.subr.bf16.mxu1 %v3053_v14 }
 0x291   : > { %1166 = vmatpush1.bf16.msra.mxu0 %v3038_v9  ;;  %1207 = vmatpush1.bf16.msra.mxu1 %v3059_v16 }
 0x292   : > { %1167 = vmatprep.subr.bf16.mxu0 %v3048_v12  ;;  %1208 = vmatprep.subr.bf16.mxu1 %v3063_v17 }
 0x295   : > { %1168 = vmatpush1.bf16.msra.mxu0 %v3051_v13  ;;  %1209 = vmatpush1.bf16.msra.mxu1 %v3071_v20 }
 0x296   : > { %1169 = vmatprep.subr.bf16.mxu0 %v3057_v15  ;;  %1210 = vmatprep.subr.bf16.mxu1 %v3075_v21 }
 0x299   : > { %1170 = vmatpush1.bf16.msra.mxu0 %v3065_v18  ;;  %1211 = vmatpush1.bf16.msra.mxu1 %v3083_v24 }
 0x29a   : > { %1171 = vmatprep.subr.bf16.mxu0 %v3069_v19  ;;  %1212 = vmatprep.subr.bf16.mxu1 %v3087_v25 }
 0x29d   : > { %1172 = vmatpush1.bf16.msra.mxu0 %v3077_v22  ;;  %1213 = vmatpush1.bf16.msra.mxu1 %v3093_v27 }
 0x29e   : > { %1173 = vmatprep.subr.bf16.mxu0 %v3079_v23  ;;  %1214 = vmatprep.subr.bf16.mxu1 %v3099_v29 }
 0x2a1   : > { %1174 = vmatpush1.bf16.msra.mxu0 %v3089_v26  ;;  %1215 = vmatpush1.bf16.msra.mxu1 %v3110_v33 }
 0x2a2   : > { %1175 = vmatprep.subr.bf16.mxu0 %v3096_v28  ;;  %1216 = vmatprep.subr.bf16.mxu1 %v3116_v35 }
 0x2a5   : > { %1176 = vmatpush1.bf16.msra.mxu0 %v3105_v31  ;;  %1217 = vmatpush1.bf16.msra.mxu1 %v3787_v58 }
 0x2a6   : > { %1260 = vmatprep.subr.bf16.mxu0 %v3788_v3  ;;  %1301 = vmatprep.subr.bf16.mxu1 %v3789_v48 }
 0x340   : > { %v992_v51 = vpop.f32.mrf.mxu0  ;;  %v1033_v60 = vpop.f32.mrf.mxu1 }
 0x342   : > { %v994_v32 = vpop.f32.mrf.mxu0  ;;  %v1035_v55 = vpop.f32.mrf.mxu1 }
 0x344   : > { %v996_v59 = vpop.f32.mrf.mxu0  ;;  %v1037_v49 = vpop.f32.mrf.mxu1 }
 0x346   : > { %v997_v54 = vpop.f32.mrf.mxu0  ;;  %v1038_v39 = vpop.f32.mrf.mxu1 }
 0x348   : > { %v1077_v34 = vpop.f32.mrf.mxu0  ;;  %v1118_v57 = vpop.f32.mrf.mxu1 }
 0x349   : > { %v1078_v62 = vadd.f32 %v1077_v34, %v992_v51  ;;  %v1119_v39 = vadd.f32 %v1118_v57, %v1033_v60 }
 0x34a   : > { %v1079_v63 = vpop.f32.mrf.mxu0  ;;  %v1120_v45 = vpop.f32.mrf.mxu1 }
 0x34b   : > { %v1125_v42 = vadd.f32 %v1078_v62, %v3220_v61  ;;  %v1080_v50 = vadd.f32 %v1079_v63, %v994_v32  ;;  %v1121_v49 = vadd.f32 %v1120_v45, %v1035_v55  ;;  %v1127_v3 = vadd.f32 %v1119_v39, %v3229_v53 }
 0x34c   : > { %v1081_v38 = vpop.f32.mrf.mxu0  ;;  %v1122_v0 = vpop.f32.mrf.mxu1 }
 0x34d   : > { %v2351_v36 = vmul.f32 -1.442695, %v1125_v42  ;;  %v1126_v46 = vadd.f32 %v1080_v50, %v3222_v30  ;;  %v1128_v54 = vadd.f32 %v1121_v49, %v3226_v52 }
 0x34e   : > { %v1082_v44 = vpop.f32.mrf.mxu0  ;;  %v1123_v48 = vpop.f32.mrf.mxu1 }
 0x34f   : > { %2566 = vpow2.f32 %v2351_v36  ;;  %v2352_v59 = vmul.f32 -1.442695, %v1126_v46  ;;  %v2353_v51 = vmul.f32 -1.442695, %v1128_v54 }
 0x351   : > { %2568 = vpow2.f32 %v2352_v59 }
 0x352   : > { %2570 = vpow2.f32 %v2353_v51 }
 0x35c   : > { %v2567_v34 = vpop.eup %2566 }
 0x35d   : > { %v1132_v62 = vadd.f32 1.0, %v2567_v34 }
 0x35e   : > { %v2569_v32 = vpop.eup %2568 }
 0x35f   : > { %2572 = vrcp.f32 %v1132_v62  ;;  %v1138_v63 = vadd.f32 1.0, %v2569_v32  ;;  %v2571_v42 = vpop.eup %2570 }
 0x360   : > { %2574 = vtanh.f32 %v1127_v3  ;;  %v1145_v0 = vadd.f32 1.0, %v2571_v42 }
 0x361   : > { %2576 = vrcp.f32 %v1138_v63 }
 0x362   : > { %2578 = vrcp.f32 %v1145_v0 }
 0x36c   : > { %v2573_v48 = vpop.eup %2572 }
 0x36d   : > { %v2575_v50 = vpop.eup %2574 }
 0x36e   : > { %v2577_v38 = vpop.eup %2576  ;;  %v1149_v55 = vmul.f32 %v2575_v50, %v2573_v48 }
 0x36f   : > { %v1148_v45 = vmul.f32 %v2577_v38, %v3293_v56  ;;  %v2579_v3 = vpop.eup %2578 }
 0x371   : > { %v1150_v60 = vadd.f32 %v1149_v55, %v1148_v45 }
 0x373   : > { %2580 = vtanh.f32 %v1150_v60  ;;  %v3355_v36 = vsel %vm1155_vm3, %v1150_v60, %v3293_v56  ;;  %v2354_v56 = vld [vmem:[%s3007_s10 + $0xc] sm:$0xf] }
 0x380   : > { %v2581_v46 = vpop.eup %2580 }
 0x381   : > { %v1152_v44 = vmul.f32 %v2581_v46, %v2579_v3 }
 0x383   : > { %v3361_v59 = vsel %vm1155_vm3, %v1152_v44, %v3299_v47 }
 0x384   : > { %v1160_v49 = vpack.c.bf16 %v3361_v59, %v3361_v59 }
 0x386   : > { %1194 = vmatmul.mubr.bf16.vlgmr.msra.gmra.mxu0 %v1160_v49  ;;  %1235 = vmatmul.mubr.bf16.vlgmr.msra.gmra.mxu1 %v1160_v49 }
 0x387   : > { %1261 = vmatpush1.bf16.msra.mxu0 %v3121_v37  ;;  %1302 = vmatpush1.bf16.msra.mxu1 %v3132_v40 }
 0x388   : > { %1278 = vmatprep.mubr.bf16.mxu0 %v3786_v41  ;;  %1319 = vmatprep.mubr.bf16.mxu1 %v3786_v41 }
 0x389   : > { %1364 = vmatprep.subr.bf16.mxu0 %v3018_v1  ;;  %1405 = vmatprep.subr.bf16.mxu1 %v3034_v7  ;;  %v3791_v1 = vld [vmem:[#allocation14_spill] sm:$0xff] }
 0x38e   : > { %2355 = vmatmul.mubr.msk.bf16.vlgmr.msra.gmra.mxu0 %vm634_vm0, %v2354_v56  ;;  %2356 = vmatmul.mubr.msk.bf16.vlgmr.msra.gmra.mxu1 %vm634_vm0, %v2354_v56 }
 0x38f   : > { %1365 = vmatpush1.bf16.msra.mxu0 %v3020_v2  ;;  %1406 = vmatpush1.bf16.msra.mxu1 %v3036_v8  ;;  %v3792_v2 = vld [vmem:[#allocation16_spill] sm:$0xff] }
 0x390   : > { %1366 = vmatprep.subr.bf16.mxu0 %v3025_v4  ;;  %1407 = vmatprep.subr.bf16.mxu1 %v3043_v10 }
 0x391   : > { %1396 = vmatprep.mubr.bf16.mxu0 %v3786_v41  ;;  %1437 = vmatprep.mubr.bf16.mxu1 %v3786_v41 }
 0x393   : > { %1367 = vmatpush1.bf16.msra.mxu0 %v3029_v5  ;;  %1408 = vmatpush1.bf16.msra.mxu1 %v3045_v11 }
 0x394   : > { %1368 = vmatprep.subr.bf16.mxu0 %v3031_v6  ;;  %1409 = vmatprep.subr.bf16.mxu1 %v3053_v14 }
 0x397   : > { %1369 = vmatpush1.bf16.msra.mxu0 %v3038_v9  ;;  %1410 = vmatpush1.bf16.msra.mxu1 %v3059_v16 }
 0x398   : > { %1370 = vmatprep.subr.bf16.mxu0 %v3048_v12  ;;  %1411 = vmatprep.subr.bf16.mxu1 %v3063_v17 }
 0x39b   : > { %1371 = vmatpush1.bf16.msra.mxu0 %v3051_v13  ;;  %1412 = vmatpush1.bf16.msra.mxu1 %v3071_v20 }
 0x39c   : > { %1372 = vmatprep.subr.bf16.mxu0 %v3057_v15  ;;  %1413 = vmatprep.subr.bf16.mxu1 %v3075_v21 }
 0x39f   : > { %1373 = vmatpush1.bf16.msra.mxu0 %v3065_v18  ;;  %1414 = vmatpush1.bf16.msra.mxu1 %v3083_v24 }
 0x3a0   : > { %1374 = vmatprep.subr.bf16.mxu0 %v3069_v19  ;;  %1415 = vmatprep.subr.bf16.mxu1 %v3087_v25 }
 0x3a3   : > { %1375 = vmatpush1.bf16.msra.mxu0 %v3077_v22  ;;  %1416 = vmatpush1.bf16.msra.mxu1 %v3093_v27 }
 0x3a4   : > { %1376 = vmatprep.subr.bf16.mxu0 %v3079_v23  ;;  %1417 = vmatprep.subr.bf16.mxu1 %v3099_v29 }
 0x3a7   : > { %1377 = vmatpush1.bf16.msra.mxu0 %v3089_v26  ;;  %1418 = vmatpush1.bf16.msra.mxu1 %v3110_v33 }
 0x3a8   : > { %1378 = vmatprep.subr.bf16.mxu0 %v3096_v28  ;;  %1419 = vmatprep.subr.bf16.mxu1 %v3116_v35 }
 0x3ab   : > { %1379 = vmatpush1.bf16.msra.mxu0 %v3105_v31  ;;  %1420 = vmatpush1.bf16.msra.mxu1 %v3787_v58 }
 0x3ac   : > { %1463 = vmatprep.subr.bf16.mxu0 %v3791_v1  ;;  %1504 = vmatprep.subr.bf16.mxu1 %v3792_v2 }
 0x446   : > { %v1195_v4 = vpop.f32.mrf.mxu0  ;;  %v1236_v5 = vpop.f32.mrf.mxu1 }
 0x448   : > { %v1197_v6 = vpop.f32.mrf.mxu0  ;;  %v1238_v7 = vpop.f32.mrf.mxu1 }
 0x44a   : > { %v1199_v8 = vpop.f32.mrf.mxu0  ;;  %v1240_v9 = vpop.f32.mrf.mxu1 }
 0x44c   : > { %v1200_v10 = vpop.f32.mrf.mxu0  ;;  %v1241_v11 = vpop.f32.mrf.mxu1 }
 0x44e   : > { %v1280_v12 = vpop.f32.mrf.mxu0  ;;  %v1321_v13 = vpop.f32.mrf.mxu1 }
 0x44f   : > { %v1281_v14 = vadd.f32 %v1280_v12, %v1195_v4  ;;  %v1322_v42 = vadd.f32 %v1321_v13, %v1236_v5  ;;  %v3434_v12 = vld [vmem:[#allocation9 + $0xec] ss:$16 sps:$4 sm:$0xff]   ;;  %v3446_v13 = vld [vmem:[#allocation9 + $0xc4] ss:$16 sps:$4 sm:$0xff]  }
 0x450   : > { %v1282_v15 = vpop.f32.mrf.mxu0  ;;  %v1323_v16 = vpop.f32.mrf.mxu1 }
 0x451   : > { %v1328_v17 = vadd.f32 %v1281_v14, %v3220_v61  ;;  %v1283_v18 = vadd.f32 %v1282_v15, %v1197_v6  ;;  %v1324_v32 = vadd.f32 %v1323_v16, %v1238_v7  ;;  %v1330_v38 = vadd.f32 %v1322_v42, %v3229_v53  ;;  %v3449_v14 = vld [vmem:[#allocation9 + $0xcc] ss:$16 sps:$4 sm:$0xff]   ;;  %v3454_v15 = vld [vmem:[#allocation9 + $0xc0] ss:$16 sps:$4 sm:$0xff]   ;;  %v3457_v16 = vld [vmem:[#allocation9 + $0xc8] ss:$16 sps:$4 sm:$0xff]  }
 0x452   : > { %v1284_v19 = vpop.f32.mrf.mxu0  ;;  %v1325_v47 = vpop.f32.mrf.mxu1 }
 0x453   : > { %v2357_v54 = vmul.f32 -1.442695, %v1328_v17  ;;  %v1329_v39 = vadd.f32 %v1283_v18, %v3222_v30  ;;  %v1331_v63 = vadd.f32 %v1324_v32, %v3226_v52  ;;  %v3460_v17 = vld [vmem:[#allocation9 + $0xa4] ss:$16 sps:$4 sm:$0xff]   ;;  %v3463_v18 = vld [vmem:[#allocation9 + $0xac] ss:$16 sps:$4 sm:$0xff]  }
 0x454   : > { %v1285_v51 = vpop.f32.mrf.mxu0  ;;  %v1326_v34 = vpop.f32.mrf.mxu1  ;;  %v3466_v19 = vld [vmem:[#allocation9 + $0xa0] ss:$16 sps:$4 sm:$0xff]   ;;  %v3469_v47 = vld [vmem:[#allocation9 + $0xa8] ss:$16 sps:$4 sm:$0xff]   ;;  %v3490_v32 = vld [vmem:[#allocation9 + $0x44] ss:$16 sps:$4 sm:$0xff]  }
 0x455   : > { %2582 = vpow2.f32 %v2357_v54  ;;  %v2358_v62 = vmul.f32 -1.442695, %v1329_v39  ;;  %v2359_v48 = vmul.f32 -1.442695, %v1331_v63  ;;  %v3472_v54 = vld [vmem:[#allocation9 + $0x84] ss:$16 sps:$4 sm:$0xff]  }
 0x456   : > { %v3475_v39 = vld [vmem:[#allocation9 + $0x8c] ss:$16 sps:$4 sm:$0xff]   ;;  %v3478_v51 = vld [vmem:[#allocation9 + $0x80] ss:$16 sps:$4 sm:$0xff]   ;;  %v3482_v34 = vld [vmem:[#allocation9 + $0x64] ss:$16 sps:$4 sm:$0xff]  }
 0x457   : > { %2584 = vpow2.f32 %v2358_v62  ;;  %v3486_v62 = vld [vmem:[#allocation9 + $0x60] ss:$16 sps:$4 sm:$0xff]  }
 0x458   : > { %2586 = vpow2.f32 %v2359_v48 }
 0x462   : > { %v2583_v50 = vpop.eup %2582 }
 0x463   : > { %v1335_v0 = vadd.f32 1.0, %v2583_v50 }
 0x464   : > { %v2585_v55 = vpop.eup %2584 }
 0x465   : > { %2588 = vrcp.f32 %v1335_v0  ;;  %v1341_v45 = vadd.f32 1.0, %v2585_v55  ;;  %v2587_v60 = vpop.eup %2586 }
 0x466   : > { %2590 = vtanh.f32 %v1330_v38  ;;  %v1348_v44 = vadd.f32 1.0, %v2587_v60 }
 0x467   : > { %2592 = vrcp.f32 %v1341_v45 }
 0x468   : > { %2594 = vrcp.f32 %v1348_v44 }
 0x472   : > { %v2589_v57 = vpop.eup %2588 }
 0x473   : > { %v2591_v3 = vpop.eup %2590 }
 0x474   : > { %v2593_v46 = vpop.eup %2592  ;;  %v1352_v49 = vmul.f32 %v2591_v3, %v2589_v57 }
 0x475   : > { %v1351_v56 = vmul.f32 %v2593_v46, %v3355_v36  ;;  %v2595_v7 = vpop.eup %2594 }
 0x477   : > { %v1353_v4 = vadd.f32 %v1352_v49, %v1351_v56 }
 0x479   : > { %2596 = vtanh.f32 %v1353_v4  ;;  %v3417_v6 = vsel %vm1358_vm4, %v1353_v4, %v3355_v36  ;;  %v3431_v36 = vld [vmem:[#allocation9 + $0xe4] ss:$16 sps:$4 sm:$0xff]  }
 0x486   : > { %v2597_v8 = vpop.eup %2596 }
 0x487   : > { %v1355_v9 = vmul.f32 %v2597_v8, %v2595_v7 }
 0x489   : > { %v3423_v10 = vsel %vm1358_vm4, %v1355_v9, %v3361_v59  ;;  %v2360_v59 = vld [vmem:[%s3007_s10 + $0x10] sm:$0xf] }
 0x48a   : > { %v1363_v11 = vpack.c.bf16 %v3423_v10, %v3423_v10 }
 0x48c   : > { %1397 = vmatmul.mubr.bf16.vlgmr.msra.gmra.mxu0 %v1363_v11  ;;  %1438 = vmatmul.mubr.bf16.vlgmr.msra.gmra.mxu1 %v1363_v11 }
 0x48d   : > { %1464 = vmatpush1.bf16.msra.mxu0 %v3121_v37  ;;  %1505 = vmatpush1.bf16.msra.mxu1 %v3132_v40  ;;  %v3440_v37 = vld [vmem:[#allocation9 + $0xe0] ss:$16 sps:$4 sm:$0xff]   ;;  %v3443_v40 = vld [vmem:[#allocation9 + $0xe8] ss:$16 sps:$4 sm:$0xff]  }
 0x48e   : > { %1481 = vmatprep.mubr.bf16.mxu0 %v3786_v41  ;;  %1522 = vmatprep.mubr.bf16.mxu1 %v3786_v41 }
 0x48f   : > { %1567 = vmatprep.subr.bf16.mxu0 %v3431_v36  ;;  %1608 = vmatprep.subr.bf16.mxu1 %v3434_v12 }
 0x494   : > { %2361 = vmatmul.mubr.msk.bf16.vlgmr.msra.gmra.mxu0 %vm634_vm0, %v2360_v59  ;;  %2362 = vmatmul.mubr.msk.bf16.vlgmr.msra.gmra.mxu1 %vm634_vm0, %v2360_v59 }
 0x495   : > { %1568 = vmatpush1.bf16.msra.mxu0 %v3440_v37  ;;  %1609 = vmatpush1.bf16.msra.mxu1 %v3443_v40 }
 0x496   : > { %1569 = vmatprep.subr.bf16.mxu0 %v3446_v13  ;;  %1610 = vmatprep.subr.bf16.mxu1 %v3449_v14 }
 0x497   : > { %1599 = vmatprep.mubr.bf16.mxu0 %v3786_v41  ;;  %1640 = vmatprep.mubr.bf16.mxu1 %v3786_v41 }
 0x499   : > { %1570 = vmatpush1.bf16.msra.mxu0 %v3454_v15  ;;  %1611 = vmatpush1.bf16.msra.mxu1 %v3457_v16 }
 0x49a   : > { %1571 = vmatprep.subr.bf16.mxu0 %v3460_v17  ;;  %1612 = vmatprep.subr.bf16.mxu1 %v3463_v18 }
 0x49d   : > { %1572 = vmatpush1.bf16.msra.mxu0 %v3466_v19  ;;  %1613 = vmatpush1.bf16.msra.mxu1 %v3469_v47 }
 0x49e   : > { %1573 = vmatprep.subr.bf16.mxu0 %v3472_v54  ;;  %1614 = vmatprep.subr.bf16.mxu1 %v3475_v39 }
 0x4a1   : > { %1574 = vmatpush1.bf16.msra.mxu0 %v3478_v51  ;;  %1615 = vmatpush1.bf16.msra.mxu1 %v3071_v20 }
 0x4a2   : > { %1575 = vmatprep.subr.bf16.mxu0 %v3482_v34  ;;  %1616 = vmatprep.subr.bf16.mxu1 %v3075_v21 }
 0x4a5   : > { %1576 = vmatpush1.bf16.msra.mxu0 %v3486_v62  ;;  %1617 = vmatpush1.bf16.msra.mxu1 %v3083_v24 }
 0x4a6   : > { %1577 = vmatprep.subr.bf16.mxu0 %v3490_v32  ;;  %1618 = vmatprep.subr.bf16.mxu1 %v3087_v25 }
 0x4a9   : > { %1578 = vmatpush1.bf16.msra.mxu0 %v3077_v22  ;;  %1619 = vmatpush1.bf16.msra.mxu1 %v3093_v27 }
 0x4aa   : > { %1579 = vmatprep.subr.bf16.mxu0 %v3079_v23  ;;  %1620 = vmatprep.subr.bf16.mxu1 %v3099_v29 }
 0x4ad   : > { %1580 = vmatpush1.bf16.msra.mxu0 %v3089_v26  ;;  %1621 = vmatpush1.bf16.msra.mxu1 %v3110_v33 }
 0x4ae   : > { %1581 = vmatprep.subr.bf16.mxu0 %v3096_v28  ;;  %1622 = vmatprep.subr.bf16.mxu1 %v3116_v35 }
 0x4b1   : > { %1582 = vmatpush1.bf16.msra.mxu0 %v3105_v31  ;;  %1623 = vmatpush1.bf16.msra.mxu1 %v3787_v58 }
 0x4b2   : > { %1666 = vmatprep.subr.bf16.mxu0 %v3791_v1  ;;  %1707 = vmatprep.subr.bf16.mxu1 %v3792_v2 }
 0x54c   : > { %v1398_v20 = vpop.f32.mrf.mxu0  ;;  %v1439_v21 = vpop.f32.mrf.mxu1 }
 0x54e   : > { %v1400_v22 = vpop.f32.mrf.mxu0  ;;  %v1441_v23 = vpop.f32.mrf.mxu1 }
 0x550   : > { %v1402_v24 = vpop.f32.mrf.mxu0  ;;  %v1443_v25 = vpop.f32.mrf.mxu1 }
 0x552   : > { %v1403_v26 = vpop.f32.mrf.mxu0  ;;  %v1444_v27 = vpop.f32.mrf.mxu1 }
 0x554   : > { %v1483_v29 = vpop.f32.mrf.mxu0  ;;  %v1524_v28 = vpop.f32.mrf.mxu1 }
 0x555   : > { %v1484_v33 = vadd.f32 %v1483_v29, %v1398_v20  ;;  %v1525_v60 = vadd.f32 %v1524_v28, %v1439_v21  ;;  %v3525_v29 = vld [vmem:[#allocation7] ss:$16 sps:$4 sm:$0xff]   ;;  %v3553_v28 = vld [vmem:[#allocation9 + $0x88] ss:$16 sps:$4 sm:$0xff]  }
 0x556   : > { %v1485_v35 = vpop.f32.mrf.mxu0  ;;  %v1526_v63 = vpop.f32.mrf.mxu1 }
 0x557   : > { %v1531_v31 = vadd.f32 %v1484_v33, %v3220_v61  ;;  %v1486_v58 = vadd.f32 %v1485_v35, %v1400_v22  ;;  %v1527_v55 = vadd.f32 %v1526_v63, %v1441_v23  ;;  %v1533_v46 = vadd.f32 %v1525_v60, %v3229_v53  ;;  %v3557_v33 = vld [vmem:[#allocation9 + $0x6c] ss:$16 sps:$4 sm:$0xff]   ;;  %v3561_v35 = vld [vmem:[#allocation9 + $0x68] ss:$16 sps:$4 sm:$0xff]  }
 0x558   : > { %v1487_v42 = vpop.f32.mrf.mxu0  ;;  %v1528_v1 = vpop.f32.mrf.mxu1  ;;  %v3565_v63 = vld [vmem:[#allocation9 + $0x4c] ss:$16 sps:$4 sm:$0xff]  }
 0x559   : > { %v2363_v48 = vmul.f32 -1.442695, %v1531_v31  ;;  %v1532_v2 = vadd.f32 %v1486_v58, %v3222_v30  ;;  %v1534_v45 = vadd.f32 %v1527_v55, %v3226_v52  ;;  %v3568_v31 = vld [vmem:[#allocation9 + $0x40] ss:$16 sps:$4 sm:$0xff]   ;;  %v3571_v58 = vld [vmem:[#allocation9 + $0x48] ss:$16 sps:$4 sm:$0xff]  }
 0x55a   : > { %v1488_v50 = vpop.f32.mrf.mxu0  ;;  %v1529_v38 = vpop.f32.mrf.mxu1  ;;  %v3574_v42 = vld [vmem:[#allocation9 + $0x24] ss:$16 sps:$4 sm:$0xff]   ;;  %v3577_v1 = vld [vmem:[#allocation9 + $0x2c] ss:$16 sps:$4 sm:$0xff]   ;;  %v3595_v55 = vld [vmem:[#allocation9 + $0x8] ss:$16 sps:$4 sm:$0xff]  }
 0x55b   : > { %2598 = vpow2.f32 %v2363_v48  ;;  %v2364_v0 = vmul.f32 -1.442695, %v1532_v2  ;;  %v2365_v57 = vmul.f32 -1.442695, %v1534_v45  ;;  %v3580_v48 = vld [vmem:[#allocation9 + $0x20] ss:$16 sps:$4 sm:$0xff]  }
 0x55c   : > { %v3583_v2 = vld [vmem:[#allocation9 + $0x28] ss:$16 sps:$4 sm:$0xff]   ;;  %v3586_v50 = vld [vmem:[#allocation9 + $0x4] ss:$16 sps:$4 sm:$0xff]   ;;  %v3589_v38 = vld [vmem:[#allocation9 + $0xc] ss:$16 sps:$4 sm:$0xff]  }
 0x55d   : > { %2600 = vpow2.f32 %v2364_v0  ;;  %v3592_v0 = vld [vmem:[#allocation9] ss:$16 sps:$4 sm:$0xff]   ;;  %v3598_v45 = vld [vmem:[#allocation7 + $0x4] ss:$16 sps:$4 sm:$0xff]   ;;  %v3601_v60 = vld [vmem:[#allocation7 + $0xc] ss:$16 sps:$4 sm:$0xff]  }
 0x55e   : > { %2602 = vpow2.f32 %v2365_v57  ;;  %3795 = vst [vmem:[#allocation15_spill] sm:$0xff] %v3598_v45  ;;  %3796 = vst [vmem:[#allocation18_spill] sm:$0xff] %v3601_v60 }
 0x568   : > { %v2599_v3 = vpop.eup %2598 }
 0x569   : > { %v1538_v44 = vadd.f32 1.0, %v2599_v3 }
 0x56a   : > { %v2601_v49 = vpop.eup %2600 }
 0x56b   : > { %2604 = vrcp.f32 %v1538_v44  ;;  %v1544_v56 = vadd.f32 1.0, %v2601_v49  ;;  %v2603_v4 = vpop.eup %2602 }
 0x56c   : > { %2606 = vtanh.f32 %v1533_v46  ;;  %v1551_v9 = vadd.f32 1.0, %v2603_v4 }
 0x56d   : > { %2608 = vrcp.f32 %v1544_v56 }
 0x56e   : > { %2610 = vrcp.f32 %v1551_v9 }
 0x578   : > { %v2605_v5 = vpop.eup %2604 }
 0x579   : > { %v2607_v7 = vpop.eup %2606 }
 0x57a   : > { %v2609_v8 = vpop.eup %2608  ;;  %v1555_v11 = vmul.f32 %v2607_v7, %v2605_v5 }
 0x57b   : > { %v1554_v59 = vmul.f32 %v2609_v8, %v3417_v6  ;;  %v2611_v23 = vpop.eup %2610 }
 0x57d   : > { %v1556_v20 = vadd.f32 %v1555_v11, %v1554_v59 }
 0x57f   : > { %2612 = vtanh.f32 %v1556_v20  ;;  %v3515_v22 = vsel %vm1561_vm5, %v1556_v20, %v3417_v6  ;;  %v3528_v6 = vld [vmem:[#allocation7 + $0x8] ss:$16 sps:$4 sm:$0xff]  }
 0x58c   : > { %v2613_v24 = vpop.eup %2612 }
 0x58d   : > { %v1558_v25 = vmul.f32 %v2613_v24, %v2611_v23 }
 0x58f   : > { %v3521_v26 = vsel %vm1561_vm5, %v1558_v25, %v3423_v10  ;;  %v2366_v10 = vld [vmem:[%s3007_s10 + $0x14] sm:$0xf] }
 0x590   : > { %v1566_v27 = vpack.c.bf16 %v3521_v26, %v3521_v26 }
 0x592   : > { %1600 = vmatmul.mubr.bf16.vlgmr.msra.gmra.mxu0 %v1566_v27  ;;  %1641 = vmatmul.mubr.bf16.vlgmr.msra.gmra.mxu1 %v1566_v27 }
 0x593   : > { %1667 = vmatpush1.bf16.msra.mxu0 %v3525_v29  ;;  %1708 = vmatpush1.bf16.msra.mxu1 %v3528_v6 }
 0x594   : > { %1684 = vmatprep.mubr.bf16.mxu0 %v3786_v41  ;;  %1725 = vmatprep.mubr.bf16.mxu1 %v3786_v41 }
 0x595   : > { %1770 = vmatprep.subr.bf16.mxu0 %v3431_v36  ;;  %1811 = vmatprep.subr.bf16.mxu1 %v3434_v12 }
 0x59a   : > { %2367 = vmatmul.mubr.msk.bf16.vlgmr.msra.gmra.mxu0 %vm634_vm0, %v2366_v10  ;;  %2368 = vmatmul.mubr.msk.bf16.vlgmr.msra.gmra.mxu1 %vm634_vm0, %v2366_v10 }
 0x59b   : > { %1771 = vmatpush1.bf16.msra.mxu0 %v3440_v37  ;;  %1812 = vmatpush1.bf16.msra.mxu1 %v3443_v40 }
 0x59c   : > { %1772 = vmatprep.subr.bf16.mxu0 %v3446_v13  ;;  %1813 = vmatprep.subr.bf16.mxu1 %v3449_v14 }
 0x59d   : > { %1802 = vmatprep.mubr.bf16.mxu0 %v3786_v41  ;;  %1843 = vmatprep.mubr.bf16.mxu1 %v3786_v41 }
 0x59f   : > { %1773 = vmatpush1.bf16.msra.mxu0 %v3454_v15  ;;  %1814 = vmatpush1.bf16.msra.mxu1 %v3457_v16 }
 0x5a0   : > { %1774 = vmatprep.subr.bf16.mxu0 %v3460_v17  ;;  %1815 = vmatprep.subr.bf16.mxu1 %v3463_v18 }
 0x5a3   : > { %1775 = vmatpush1.bf16.msra.mxu0 %v3466_v19  ;;  %1816 = vmatpush1.bf16.msra.mxu1 %v3469_v47 }
 0x5a4   : > { %1776 = vmatprep.subr.bf16.mxu0 %v3472_v54  ;;  %1817 = vmatprep.subr.bf16.mxu1 %v3475_v39 }
 0x5a7   : > { %1777 = vmatpush1.bf16.msra.mxu0 %v3478_v51  ;;  %1818 = vmatpush1.bf16.msra.mxu1 %v3553_v28 }
 0x5a8   : > { %1778 = vmatprep.subr.bf16.mxu0 %v3482_v34  ;;  %1819 = vmatprep.subr.bf16.mxu1 %v3557_v33 }
 0x5ab   : > { %1779 = vmatpush1.bf16.msra.mxu0 %v3486_v62  ;;  %1820 = vmatpush1.bf16.msra.mxu1 %v3561_v35 }
 0x5ac   : > { %1780 = vmatprep.subr.bf16.mxu0 %v3490_v32  ;;  %1821 = vmatprep.subr.bf16.mxu1 %v3565_v63 }
 0x5af   : > { %1781 = vmatpush1.bf16.msra.mxu0 %v3568_v31  ;;  %1822 = vmatpush1.bf16.msra.mxu1 %v3571_v58 }
 0x5b0   : > { %1782 = vmatprep.subr.bf16.mxu0 %v3574_v42  ;;  %1823 = vmatprep.subr.bf16.mxu1 %v3577_v1 }
 0x5b3   : > { %1783 = vmatpush1.bf16.msra.mxu0 %v3580_v48  ;;  %1824 = vmatpush1.bf16.msra.mxu1 %v3583_v2 }
 0x5b4   : > { %1784 = vmatprep.subr.bf16.mxu0 %v3586_v50  ;;  %1825 = vmatprep.subr.bf16.mxu1 %v3589_v38 }
 0x5b7   : > { %1785 = vmatpush1.bf16.msra.mxu0 %v3592_v0  ;;  %1826 = vmatpush1.bf16.msra.mxu1 %v3595_v55 }
 0x5b8   : > { %1869 = vmatprep.subr.bf16.mxu0 %v3598_v45  ;;  %1910 = vmatprep.subr.bf16.mxu1 %v3601_v60 }
 0x652   : > { %v1601_v57 = vpop.f32.mrf.mxu0  ;;  %v1642_v3 = vpop.f32.mrf.mxu1 }
 0x654   : > { %v1603_v46 = vpop.f32.mrf.mxu0  ;;  %v1644_v44 = vpop.f32.mrf.mxu1 }
 0x656   : > { %v1605_v49 = vpop.f32.mrf.mxu0  ;;  %v1646_v56 = vpop.f32.mrf.mxu1 }
 0x658   : > { %v1606_v4 = vpop.f32.mrf.mxu0  ;;  %v1647_v5 = vpop.f32.mrf.mxu1 }
 0x65a   : > { %v1686_v7 = vpop.f32.mrf.mxu0  ;;  %v1727_v8 = vpop.f32.mrf.mxu1 }
 0x65b   : > { %v1687_v9 = vadd.f32 %v1686_v7, %v1601_v57  ;;  %v1728_v5 = vadd.f32 %v1727_v8, %v1642_v3  ;;  %v2378_v8 = vld [vmem:[%s3007_s10 + $0x1c] sm:$0xf] }
 0x65c   : > { %v1688_v11 = vpop.f32.mrf.mxu0  ;;  %v1729_v59 = vpop.f32.mrf.mxu1 }
 0x65d   : > { %v1734_v20 = vadd.f32 %v1687_v9, %v3220_v61  ;;  %v1689_v21 = vadd.f32 %v1688_v11, %v1603_v46  ;;  %v1730_v56 = vadd.f32 %v1729_v59, %v1644_v44  ;;  %v1736_v45 = vadd.f32 %v1728_v5, %v3229_v53 }
 0x65e   : > { %v1690_v23 = vpop.f32.mrf.mxu0  ;;  %v1731_v24 = vpop.f32.mrf.mxu1 }
 0x65f   : > { %v2369_v25 = vmul.f32 -1.442695, %v1734_v20  ;;  %v1735_v27 = vadd.f32 %v1689_v21, %v3222_v30  ;;  %v1737_v4 = vadd.f32 %v1730_v56, %v3226_v52 }
 0x660   : > { %v1691_v10 = vpop.f32.mrf.mxu0  ;;  %v1732_v60 = vpop.f32.mrf.mxu1 }
 0x661   : > { %2614 = vpow2.f32 %v2369_v25  ;;  %v2370_v49 = vmul.f32 -1.442695, %v1735_v27  ;;  %v2371_v57 = vmul.f32 -1.442695, %v1737_v4 }
 0x663   : > { %2616 = vpow2.f32 %v2370_v49 }
 0x664   : > { %2618 = vpow2.f32 %v2371_v57 }
 0x66e   : > { %v2615_v7 = vpop.eup %2614 }
 0x66f   : > { %v1741_v9 = vadd.f32 1.0, %v2615_v7 }
 0x670   : > { %v2617_v46 = vpop.eup %2616 }
 0x671   : > { %2620 = vrcp.f32 %v1741_v9  ;;  %v1747_v11 = vadd.f32 1.0, %v2617_v46  ;;  %v2619_v20 = vpop.eup %2618 }
 0x672   : > { %2622 = vtanh.f32 %v1736_v45  ;;  %v1754_v24 = vadd.f32 1.0, %v2619_v20 }
 0x673   : > { %2624 = vrcp.f32 %v1747_v11 }
 0x674   : > { %2626 = vrcp.f32 %v1754_v24 }
 0x67e   : > { %v2621_v60 = vpop.eup %2620 }
 0x67f   : > { %v2623_v21 = vpop.eup %2622 }
 0x680   : > { %v2625_v23 = vpop.eup %2624  ;;  %v1758_v44 = vmul.f32 %v2623_v21, %v2621_v60 }
 0x681   : > { %v1757_v59 = vmul.f32 %v2625_v23, %v3515_v22  ;;  %v2627_v45 = vpop.eup %2626 }
 0x683   : > { %v1759_v3 = vadd.f32 %v1758_v44, %v1757_v59 }
 0x685   : > { %2628 = vtanh.f32 %v1759_v3  ;;  %v3613_v25 = vsel %vm1764_vm6, %v1759_v3, %v3515_v22  ;;  %v2372_v22 = vld [vmem:[%s3007_s10 + $0x18] sm:$0xf] }
 0x692   : > { %v2629_v27 = vpop.eup %2628 }
 0x693   : > { %v1761_v10 = vmul.f32 %v2629_v27, %v2627_v45 }
 0x695   : > { %v3619_v49 = vsel %vm1764_vm6, %v1761_v10, %v3521_v26 }
 0x696   : > { %v1769_v56 = vpack.c.bf16 %v3619_v49, %v3619_v49 }
 0x698   : > { %1803 = vmatmul.mubr.bf16.vlgmr.msra.gmra.mxu0 %v1769_v56  ;;  %1844 = vmatmul.mubr.bf16.vlgmr.msra.gmra.mxu1 %v1769_v56 }
 0x699   : > { %1870 = vmatpush1.bf16.msra.mxu0 %v3525_v29  ;;  %1911 = vmatpush1.bf16.msra.mxu1 %v3528_v6 }
 0x69a   : > { %1887 = vmatprep.mubr.bf16.mxu0 %v3786_v41  ;;  %1928 = vmatprep.mubr.bf16.mxu1 %v3786_v41 }
 0x69b   : > { %1973 = vmatprep.subr.bf16.mxu0 %v3431_v36  ;;  %2014 = vmatprep.subr.bf16.mxu1 %v3434_v12  ;;  %v3798_v36 = vld [vmem:[#allocation15_spill] sm:$0xff]  ;;  %v3799_v12 = vld [vmem:[#allocation18_spill] sm:$0xff] }
 0x6a0   : > { %2373 = vmatmul.mubr.msk.bf16.vlgmr.msra.gmra.mxu0 %vm634_vm0, %v2372_v22  ;;  %2374 = vmatmul.mubr.msk.bf16.vlgmr.msra.gmra.mxu1 %vm634_vm0, %v2372_v22 }
 0x6a1   : > { %1974 = vmatpush1.bf16.msra.mxu0 %v3440_v37  ;;  %2015 = vmatpush1.bf16.msra.mxu1 %v3443_v40 }
 0x6a2   : > { %1975 = vmatprep.subr.bf16.mxu0 %v3446_v13  ;;  %2016 = vmatprep.subr.bf16.mxu1 %v3449_v14 }
 0x6a3   : > { %2005 = vmatprep.mubr.bf16.mxu0 %v3786_v41  ;;  %2046 = vmatprep.mubr.bf16.mxu1 %v3786_v41 }
 0x6a5   : > { %1976 = vmatpush1.bf16.msra.mxu0 %v3454_v15  ;;  %2017 = vmatpush1.bf16.msra.mxu1 %v3457_v16 }
 0x6a6   : > { %1977 = vmatprep.subr.bf16.mxu0 %v3460_v17  ;;  %2018 = vmatprep.subr.bf16.mxu1 %v3463_v18 }
 0x6a9   : > { %1978 = vmatpush1.bf16.msra.mxu0 %v3466_v19  ;;  %2019 = vmatpush1.bf16.msra.mxu1 %v3469_v47 }
 0x6aa   : > { %1979 = vmatprep.subr.bf16.mxu0 %v3472_v54  ;;  %2020 = vmatprep.subr.bf16.mxu1 %v3475_v39 }
 0x6ad   : > { %1980 = vmatpush1.bf16.msra.mxu0 %v3478_v51  ;;  %2021 = vmatpush1.bf16.msra.mxu1 %v3553_v28 }
 0x6ae   : > { %1981 = vmatprep.subr.bf16.mxu0 %v3482_v34  ;;  %2022 = vmatprep.subr.bf16.mxu1 %v3557_v33 }
 0x6b1   : > { %1982 = vmatpush1.bf16.msra.mxu0 %v3486_v62  ;;  %2023 = vmatpush1.bf16.msra.mxu1 %v3561_v35 }
 0x6b2   : > { %1983 = vmatprep.subr.bf16.mxu0 %v3490_v32  ;;  %2024 = vmatprep.subr.bf16.mxu1 %v3565_v63 }
 0x6b5   : > { %1984 = vmatpush1.bf16.msra.mxu0 %v3568_v31  ;;  %2025 = vmatpush1.bf16.msra.mxu1 %v3571_v58 }
 0x6b6   : > { %1985 = vmatprep.subr.bf16.mxu0 %v3574_v42  ;;  %2026 = vmatprep.subr.bf16.mxu1 %v3577_v1 }
 0x6b9   : > { %1986 = vmatpush1.bf16.msra.mxu0 %v3580_v48  ;;  %2027 = vmatpush1.bf16.msra.mxu1 %v3583_v2 }
 0x6ba   : > { %1987 = vmatprep.subr.bf16.mxu0 %v3586_v50  ;;  %2028 = vmatprep.subr.bf16.mxu1 %v3589_v38 }
 0x6bd   : > { %1988 = vmatpush1.bf16.msra.mxu0 %v3592_v0  ;;  %2029 = vmatpush1.bf16.msra.mxu1 %v3595_v55 }
 0x6be   : > { %2072 = vmatprep.subr.bf16.mxu0 %v3798_v36  ;;  %2113 = vmatprep.subr.bf16.mxu1 %v3799_v12 }
 0x758   : > { %v1804_v37 = vpop.f32.mrf.mxu0  ;;  %v1845_v40 = vpop.f32.mrf.mxu1 }
 0x75a   : > { %v1806_v13 = vpop.f32.mrf.mxu0  ;;  %v1847_v14 = vpop.f32.mrf.mxu1 }
 0x75c   : > { %v1808_v15 = vpop.f32.mrf.mxu0  ;;  %v1849_v16 = vpop.f32.mrf.mxu1 }
 0x75e   : > { %v1809_v17 = vpop.f32.mrf.mxu0  ;;  %v1850_v18 = vpop.f32.mrf.mxu1 }
 0x760   : > { %v1889_v19 = vpop.f32.mrf.mxu0  ;;  %v1930_v47 = vpop.f32.mrf.mxu1 }
 0x761   : > { %v1890_v54 = vadd.f32 %v1889_v19, %v1804_v37  ;;  %v1931_v1 = vadd.f32 %v1930_v47, %v1845_v40 }
 0x762   : > { %v1891_v39 = vpop.f32.mrf.mxu0  ;;  %v1932_v51 = vpop.f32.mrf.mxu1 }
 0x763   : > { %v1937_v34 = vadd.f32 %v1890_v54, %v3220_v61  ;;  %v1892_v62 = vadd.f32 %v1891_v39, %v1806_v13  ;;  %v1933_v58 = vadd.f32 %v1932_v51, %v1847_v14  ;;  %v1939_v50 = vadd.f32 %v1931_v1, %v3229_v53 }
 0x764   : > { %v1893_v32 = vpop.f32.mrf.mxu0  ;;  %v1934_v26 = vpop.f32.mrf.mxu1 }
 0x765   : > { %v2375_v28 = vmul.f32 -1.442695, %v1937_v34  ;;  %v1938_v33 = vadd.f32 %v1892_v62, %v3222_v30  ;;  %v1940_v42 = vadd.f32 %v1933_v58, %v3226_v52 }
 0x766   : > { %v1894_v35 = vpop.f32.mrf.mxu0  ;;  %v1935_v63 = vpop.f32.mrf.mxu1 }
 0x767   : > { %2630 = vpow2.f32 %v2375_v28  ;;  %v2376_v31 = vmul.f32 -1.442695, %v1938_v33  ;;  %v2377_v48 = vmul.f32 -1.442695, %v1940_v42 }
 0x769   : > { %2632 = vpow2.f32 %v2376_v31 }
 0x76a   : > { %2634 = vpow2.f32 %v2377_v48 }
 0x774   : > { %v2631_v2 = vpop.eup %2630 }
 0x775   : > { %v1944_v38 = vadd.f32 1.0, %v2631_v2 }
 0x776   : > { %v2633_v0 = vpop.eup %2632 }
 0x777   : > { %2636 = vrcp.f32 %v1944_v38  ;;  %v1950_v55 = vadd.f32 1.0, %v2633_v0  ;;  %v2635_v4 = vpop.eup %2634 }
 0x778   : > { %2638 = vtanh.f32 %v1939_v50  ;;  %v1957_v9 = vadd.f32 1.0, %v2635_v4 }
 0x779   : > { %2640 = vrcp.f32 %v1950_v55 }
 0x77a   : > { %2642 = vrcp.f32 %v1957_v9 }
 0x784   : > { %v2637_v5 = vpop.eup %2636 }
 0x785   : > { %v2639_v57 = vpop.eup %2638 }
 0x786   : > { %v2641_v7 = vpop.eup %2640  ;;  %v1961_v46 = vmul.f32 %v2639_v57, %v2637_v5 }
 0x787   : > { %v1960_v11 = vmul.f32 %v2641_v7, %v3613_v25  ;;  %v2643_v23 = vpop.eup %2642 }
 0x789   : > { %v1962_v20 = vadd.f32 %v1961_v46, %v1960_v11 }
 0x78b   : > { %2644 = vtanh.f32 %v1962_v20  ;;  %v3675_v21 = vsel %vm1967_vm7, %v1962_v20, %v3613_v25 }
 0x798   : > { %v2645_v24 = vpop.eup %2644 }
 0x799   : > { %v1964_v44 = vmul.f32 %v2645_v24, %v2643_v23 }
 0x79b   : > { %v3681_v59 = vsel %vm1967_vm7, %v1964_v44, %v3619_v49 }
 0x79c   : > { %v1972_v3 = vpack.c.bf16 %v3681_v59, %v3681_v59 }
 0x79e   : > { %2006 = vmatmul.mubr.bf16.vlgmr.msra.gmra.mxu0 %v1972_v3  ;;  %2047 = vmatmul.mubr.bf16.vlgmr.msra.gmra.mxu1 %v1972_v3 }
 0x79f   : > { %2073 = vmatpush1.bf16.msra.mxu0 %v3525_v29  ;;  %2114 = vmatpush1.bf16.msra.mxu1 %v3528_v6 }
 0x7a0   : > { %2090 = vmatprep.mubr.bf16.mxu0 %v3786_v41  ;;  %2131 = vmatprep.mubr.bf16.mxu1 %v3786_v41 }
 0x7a6   : > { %2379 = vmatmul.mubr.msk.bf16.vlgmr.msra.gmra.mxu0 %vm634_vm0, %v2378_v8  ;;  %2380 = vmatmul.mubr.msk.bf16.vlgmr.msra.gmra.mxu1 %vm634_vm0, %v2378_v8 }
 0x85e   : > { %v2007_v25 = vpop.f32.mrf.mxu0  ;;  %v2048_v45 = vpop.f32.mrf.mxu1 }
 0x860   : > { %v2009_v27 = vpop.f32.mrf.mxu0  ;;  %v2050_v10 = vpop.f32.mrf.mxu1 }
 0x862   : > { %v2011_v49 = vpop.f32.mrf.mxu0  ;;  %v2052_v56 = vpop.f32.mrf.mxu1 }
 0x864   : > { %v2012_v22 = vpop.f32.mrf.mxu0  ;;  %v2053_v36 = vpop.f32.mrf.mxu1 }
 0x866   : > { %v2092_v29 = vpop.f32.mrf.mxu0  ;;  %v2133_v12 = vpop.f32.mrf.mxu1 }
 0x867   : > { %v2093_v6 = vadd.f32 %v2092_v29, %v2007_v25  ;;  %v2134_v51 = vadd.f32 %v2133_v12, %v2048_v45 }
 0x868   : > { %v2094_v37 = vpop.f32.mrf.mxu0  ;;  %v2135_v40 = vpop.f32.mrf.mxu1 }
 0x869   : > { %v2140_v41 = vadd.f32 %v2093_v6, %v3220_v61  ;;  %v2095_v13 = vadd.f32 %v2094_v37, %v2009_v27  ;;  %v2136_v54 = vadd.f32 %v2135_v40, %v2050_v10  ;;  %v2142_v32 = vadd.f32 %v2134_v51, %v3229_v53 }
 0x86a   : > { %v2096_v14 = vpop.f32.mrf.mxu0  ;;  %v2137_v15 = vpop.f32.mrf.mxu1 }
 0x86b   : > { %v2381_v16 = vmul.f32 -1.442695, %v2140_v41  ;;  %v2141_v17 = vadd.f32 %v2095_v13, %v3222_v30  ;;  %v2143_v39 = vadd.f32 %v2136_v54, %v3226_v52 }
 0x86c   : > { %v2097_v18 = vpop.f32.mrf.mxu0  ;;  %v2138_v19 = vpop.f32.mrf.mxu1 }
 0x86d   : > { %2646 = vpow2.f32 %v2381_v16  ;;  %v2382_v47 = vmul.f32 -1.442695, %v2141_v17  ;;  %v2383_v34 = vmul.f32 -1.442695, %v2143_v39 }
 0x86f   : > { %2648 = vpow2.f32 %v2382_v47 }
 0x870   : > { %2650 = vpow2.f32 %v2383_v34 }
 0x87a   : > { %v2647_v62 = vpop.eup %2646 }
 0x87b   : > { %v2147_v61 = vadd.f32 1.0, %v2647_v62 }
 0x87c   : > { %v2649_v26 = vpop.eup %2648 }
 0x87d   : > { %2652 = vrcp.f32 %v2147_v61  ;;  %v2153_v28 = vadd.f32 1.0, %v2649_v26  ;;  %v2651_v30 = vpop.eup %2650 }
 0x87e   : > { %2654 = vtanh.f32 %v2142_v32  ;;  %v2160_v31 = vadd.f32 1.0, %v2651_v30 }
 0x87f   : > { %2656 = vrcp.f32 %v2153_v28 }
 0x880   : > { %2658 = vrcp.f32 %v2160_v31 }
 0x88a   : > { %v2653_v33 = vpop.eup %2652 }
 0x88b   : > { %v2655_v35 = vpop.eup %2654 }
 0x88c   : > { %v2657_v63 = vpop.eup %2656  ;;  %v2164_v58 = vmul.f32 %v2655_v35, %v2653_v33 }
 0x88d   : > { %v2163_v52 = vmul.f32 %v2657_v63, %v3675_v21  ;;  %v2659_v48 = vpop.eup %2658 }
 0x88f   : > { %v2165_v42 = vadd.f32 %v2164_v58, %v2163_v52 }
 0x891   : > { %2660 = vtanh.f32 %v2165_v42  ;;  %v2172_v1 = vsel %vm2170_vm1, %v2165_v42, %v3675_v21 }
 0x892   : > { %2174 = vst [vmem:[#allocation3] sm:$0xff] %v2172_v1 }
 0x89e   : > { %v2661_v2 = vpop.eup %2660  ;;  %2178 = sbr.rel (%p2384_p4) target bundleno = 2212 (0x8a4), region = 60 }
 0x89f   : > { %v2167_v50 = vmul.f32 %v2661_v2, %v2659_v48 }
 0x8a1   : > { %v2171_v38 = vsel %vm2170_vm1, %v2167_v50, %v3681_v59 }
 0x8a2   : > { %2173 = vst [vmem:[#allocation2] sm:$0xff] %v2171_v38 }
 0x8a3   : > { %2179 = vst [vmem:[#allocation10] sm:$0xff] %v2171_v38 }
 0x8a4 PF: > { %p3708_p2 = scmp.eq.s32.totalorder %s2286_s24, 1  ;;  %s2871_s18 = smov [#allocation10]  }
 0x8a5   : > { %s2189_s8 = sshll.u32 %s2871_s18, 4  ;;  %s2190_s8 = int_to_ptr.vmem [resolvable:$true] %s2189_s8 }
 0x8a6   : > { %s2778_s7 = scalar_lea.vmem %s2190_s8, 128  ;;  %p2785_p9 = scmp.lt.s32.totalorder %s2190_s8, %s2190_s8 }
 0x8a7   : > { %p2779_p3 = scmp.ne.s32.totalorder %s2190_s8, %s2778_s7  ;;  %p2786_p10 = scmp.lt.s32.totalorder %s2778_s7, %s2778_s7 }
 0x8a9   : > { %p2780_p7 = pnand %p2779_p3, %p3708_p2  ;;  %p2787_p12 = por %p2786_p10, %p2785_p9 }
 0x8ab   : > { %p2781_p6 = pneg %p2780_p7 }
 0x8ad   : > { %p2788_p11 = pnand %p2787_p12, %p2781_p6 }
 0x8af   : > { %2791 = shalt.err (!%p2788_p11)
}
 0x8b0   : > { %2401 = dma.vmem_to_hbm [thread:$0]  (%p3708_p2), %s2190_s8, 128, %s3746_s5, [#allocation6]  }
 0x8b1   : > { %2835 = dma.done.wait (%p3708_p2), [#allocation6], 128  }
 0x8b2   : > { %2837 = vsyncadd (%p3708_p2), [#allocation6], 4294967168 }
 0x8b3 PF: > { %s20_s23 = sadd.s32 1, %s2860_s23   ;;  %s3803_s18 = smov %s2844_s19 }
 0x8b4   : > { %p17_p1 = scmp.ge.s32.totalorder %s20_s23, 4   ;;  %s3804_s19 = smov %s2848_s20 }
 0x8b5   : > { %s3805_s20 = smov %s2989_s6  ;;  %s3806_s21 = smov %s2856_s22 }
 0x8b6   : > { %s3807_s22 = smov %s3809_s16  ;;  %19 = sbr.rel (!%p17_p1) target bundleno = 6 (0x6), region = 104 }
 0x8bb   :  { %2202 = vsyncpa [#allocation5], 1 }
 0x8bc   :  { %2204 = vsyncpa [#allocation5 + $0x1], 1 }
 0x8bd   :  { %2205 = vsyncpa [#allocation8], 1 }
 0x8be   :  { %2206 = vsyncpa [#allocation6], 1 }
 0x8bf   :  { %2208 = vsyncpa [#allocation6 + $0x1], 1 }

</bundles_post_ra>
